<compile_context>
chip_gen: v7x
topology: tpu7x:2x2x1
jax: 0.10.0
libtpu: 0.0.40
codegen_flags: <defaults>
</compile_context>

<pallas_src>
import jax
import jax.numpy as jnp
from jax import lax
from jax.experimental import pallas as pl
from jax.experimental.pallas import tpu as pltpu

# ----------------------------- configuration -------------------------------
BATCH = 2          # B
SEQ = 8            # T
EMBED = 32         # embedding_num (E)
HIDDEN = 32        # hidden_num (H)
WORD_SIZE = 64     # word_size (V)


# ------------------------------ Pallas kernel ------------------------------
def _poetry_lstm_kernel(ids_ref,      # (B, T)   int32   SMEM
                        emb_ref,      # (W, E)   f32     VMEM
                        wih0_ref,     # (E, 4H)  layer-0 W_ih^T
                        whh0_ref,     # (H, 4H)  layer-0 W_hh^T
                        b0_ref,       # (1, 4H)  b_ih_l0 + b_hh_l0
                        wih1_ref,     # (H, 4H)  layer-1 W_ih^T
                        whh1_ref,     # (H, 4H)  layer-1 W_hh^T
                        b1_ref,       # (1, 4H)  b_ih_l1 + b_hh_l1
                        wlin_ref,     # (H, V)   linear W^T
                        blin_ref,     # (1, V)   linear b
                        pre_ref,      # (B*T, V) logits, flatten(0,1) order
                        hn_ref,       # (2, B, H)
                        cn_ref,       # (2, B, H)
                        x_s,          # (T*B, E) VMEM scratch: gathered embeds
                        hid_s):       # (B*T, H) VMEM scratch: layer-1 hidden
    B, T = ids_ref.shape
    H = whh0_ref.shape[0]
    f32 = jnp.float32

    # ---- prologue: gather all embeddings (off the recurrence path) --------
    for t in range(T):
        for b in range(B):
            idx = ids_ref[b, t]                       # scalar from SMEM
            r = t * B + b                             # time-major rows
            x_s[r:r + 1, :] = emb_ref[pl.ds(idx, 1), :]

    # ---- hoisted weight / bias loads --------------------------------------
    whh0 = whh0_ref[...]
    wih1 = wih1_ref[...]
    whh1 = whh1_ref[...]
    b1 = jnp.broadcast_to(b1_ref[...], (B, 4 * H))    # broadcast once

    # Layer-0 input projections for every timestep in a single matmul.
    xg0_all = (jnp.dot(x_s[...], wih0_ref[...], preferred_element_type=f32)
               + b0_ref[...])                         # (T*B, 4H)

    # Zero initial state, carried in registers (loop fully unrolled).
    h0 = jnp.zeros((B, H), f32)
    c0 = jnp.zeros((B, H), f32)
    h1 = jnp.zeros((B, H), f32)
    c1 = jnp.zeros((B, H), f32)

    def cell(gates, c):
        # PyTorch gate order: i, f, g, o.  Whole-vreg nonlinearities (2 EUP
        # passes over (B, 4H) = (2, 128)), slice afterwards.
        sg = jax.nn.sigmoid(gates)
        tg = jnp.tanh(gates)
        i = sg[:, 0 * H:1 * H]
        f = sg[:, 1 * H:2 * H]
        g = tg[:, 2 * H:3 * H]
        o = sg[:, 3 * H:4 * H]
        c_new = f * c + i * g
        h_new = o * jnp.tanh(c_new)
        return h_new, c_new

    # ---- recurrence (static Python loop: fully unrolled) ------------------
    for t in range(T):
        # layer 0: only the recurrent matmul is on the critical path.
        gates0 = (xg0_all[t * B:(t + 1) * B, :]
                  + jnp.dot(h0, whh0, preferred_element_type=f32))
        h0, c0 = cell(gates0, c0)

        # layer 1: two small matmuls; h1 @ whh1 only depends on the previous
        # step so the scheduler can overlap it with layer-0 work above.
        gates1 = (jnp.dot(h0, wih1, preferred_element_type=f32)
                  + jnp.dot(h1, whh1, preferred_element_type=f32)
                  + b1)
        h1, c1 = cell(gates1, c1)

        # Stash layer-1 hidden in flatten(0,1) (batch-major) row order.
        # Static offsets -> plain masked row stores, off the critical path.
        for b in range(B):
            hid_s[b * T + t: b * T + t + 1, :] = h1[b:b + 1, :]

    # ---- epilogue: dropout(eval) == identity; one fused linear head -------
    logits = (jnp.dot(hid_s[...], wlin_ref[...], preferred_element_type=f32)
              + blin_ref[...])                        # (B*T, V)
    pre_ref[...] = logits.astype(pre_ref.dtype)

    hn_ref[0] = h0
    hn_ref[1] = h1
    cn_ref[0] = c0
    cn_ref[1] = c1


# ------------------------------ JAX wrapper --------------------------------
@jax.jit
def poetry_model_forward(params, token_ids):
    """Pallas-backed equivalent of Poetry_Model.forward (model='lstm',
    Word2Vec=False, h_0=c_0=None)."""
    B, T = token_ids.shape
    E = params["embedding"].shape[1]
    H = params["w_hh_l0"].shape[1]
    V = params["linear_w"].shape[0]

    # Pre-transpose weights / fold biases (exact algebraic rewrite).
    wih0_t = params["w_ih_l0"].T                                   # (E, 4H)
    whh0_t = params["w_hh_l0"].T                                   # (H, 4H)
    b0 = (params["b_ih_l0"] + params["b_hh_l0"]).reshape(1, 4 * H)
    wih1_t = params["w_ih_l1"].T                                   # (H, 4H)
    whh1_t = params["w_hh_l1"].T                                   # (H, 4H)
    b1 = (params["b_ih_l1"] + params["b_hh_l1"]).reshape(1, 4 * H)
    wlin_t = params["linear_w"].T                                  # (H, V)
    blin = params["linear_b"].reshape(1, V)

    smem = pl.BlockSpec(memory_space=pltpu.MemorySpace.SMEM)
    vmem = pl.BlockSpec(memory_space=pltpu.MemorySpace.VMEM)

    pre, h_n, c_n = pl.pallas_call(
        _poetry_lstm_kernel,
        out_shape=(
            jax.ShapeDtypeStruct((B * T, V), jnp.float32),
            jax.ShapeDtypeStruct((2, B, H), jnp.float32),
            jax.ShapeDtypeStruct((2, B, H), jnp.float32),
        ),
        in_specs=[smem] + [vmem] * 9,
        out_specs=(vmem, vmem, vmem),
        scratch_shapes=[
            pltpu.VMEM((T * B, E), jnp.float32),   # gathered embeddings
            pltpu.VMEM((B * T, H), jnp.float32),   # layer-1 hidden history
        ],
    )(token_ids.astype(jnp.int32),
      params["embedding"].astype(jnp.float32),
      wih0_t, whh0_t, b0, wih1_t, whh1_t, b1, wlin_t, blin)

    # pre is already in PyTorch flatten(0,1) row order: no transpose needed.
    return pre, (h_n, c_n)


# --------------------------- pure-JAX reference -----------------------------
def _reference_forward(params, token_ids):
    B, T = token_ids.shape
    H = params["w_hh_l0"].shape[1]
    x = jnp.take(params["embedding"], token_ids, axis=0).astype(jnp.float32)

    def layer(x_btE, wih, whh, bih, bhh):
        def step(carry, x_t):
            h, c = carry
            gates = x_t @ wih.T + bih + h @ whh.T + bhh
            i, f, g, o = jnp.split(gates, 4, axis=-1)
            i = jax.nn.sigmoid(i)
            f = jax.nn.sigmoid(f)
            g = jnp.tanh(g)
            o = jax.nn.sigmoid(o)
            c = f * c + i * g
            h = o * jnp.tanh(c)
            return (h, c), h

        init = (jnp.zeros((B, H), jnp.float32), jnp.zeros((B, H), jnp.float32))
        (h, c), ys = lax.scan(step, init, jnp.transpose(x_btE, (1, 0, 2)))
        return jnp.transpose(ys, (1, 0, 2)), h, c

    y0, h0, c0 = layer(x, params["w_ih_l0"], params["w_hh_l0"],
                       params["b_ih_l0"], params["b_hh_l0"])
    y1, h1, c1 = layer(y0, params["w_ih_l1"], params["w_hh_l1"],
                       params["b_ih_l1"], params["b_hh_l1"])
    flat = y1.reshape(B * T, H)
    pre = flat @ params["linear_w"].T + params["linear_b"]
    return pre, (jnp.stack([h0, h1]), jnp.stack([c0, c1]))


# ---------------------------------- main ------------------------------------
def _init_params(key):
    ks = jax.random.split(key, 12)
    bound = 1.0 / jnp.sqrt(HIDDEN)

    def u(k, shape):
        return jax.random.uniform(k, shape, jnp.float32, -bound, bound)

    return {
        "embedding": jax.random.normal(ks[0], (WORD_SIZE, EMBED), jnp.float32),
        "w_ih_l0": u(ks[1], (4 * HIDDEN, EMBED)),
        "w_hh_l0": u(ks[2], (4 * HIDDEN, HIDDEN)),
        "b_ih_l0": u(ks[3], (4 * HIDDEN,)),
        "b_hh_l0": u(ks[4], (4 * HIDDEN,)),
        "w_ih_l1": u(ks[5], (4 * HIDDEN, HIDDEN)),
        "w_hh_l1": u(ks[6], (4 * HIDDEN, HIDDEN)),
        "b_ih_l1": u(ks[7], (4 * HIDDEN,)),
        "b_hh_l1": u(ks[8], (4 * HIDDEN,)),
        "linear_w": u(ks[9], (WORD_SIZE, HIDDEN)),
        "linear_b": u(ks[10], (WORD_SIZE,)),
    }


if __name__ == "__main__":
    key = jax.random.PRNGKey(0)
    pkey, xkey = jax.random.split(key)
    params = _init_params(pkey)
    token_ids = jax.random.randint(xkey, (BATCH, SEQ), 0, WORD_SIZE, jnp.int32)

    pre, (h_n, c_n) = poetry_model_forward(params, token_ids)
    jax.block_until_ready((pre, h_n, c_n))

    pre_ref, (h_ref, c_ref) = _reference_forward(params, token_ids)
    assert pre.shape == (BATCH * SEQ, WORD_SIZE)
    assert h_n.shape == (2, BATCH, HIDDEN) and c_n.shape == (2, BATCH, HIDDEN)
    assert jnp.allclose(pre, pre_ref, rtol=1e-5, atol=1e-5)
    assert jnp.allclose(h_n, h_ref, rtol=1e-5, atol=1e-5)
    assert jnp.allclose(c_n, c_ref, rtol=1e-5, atol=1e-5)

    print("KERNEL_OK")
</pallas_src>

<mosaic_0001>
module attributes {stable_mosaic.version = 11 : i64} {
  func.func @_poetry_lstm_kernel(%arg0: memref<2x8xi32, #tpu.memory_space<smem>>, %arg1: memref<64x32xf32, #tpu.memory_space<vmem>>, %arg2: memref<32x128xf32, #tpu.memory_space<vmem>>, %arg3: memref<32x128xf32, #tpu.memory_space<vmem>>, %arg4: memref<1x128xf32, #tpu.memory_space<vmem>>, %arg5: memref<32x128xf32, #tpu.memory_space<vmem>>, %arg6: memref<32x128xf32, #tpu.memory_space<vmem>>, %arg7: memref<1x128xf32, #tpu.memory_space<vmem>>, %arg8: memref<32x64xf32, #tpu.memory_space<vmem>>, %arg9: memref<1x64xf32, #tpu.memory_space<vmem>>, %arg10: memref<16x64xf32, #tpu.memory_space<vmem>>, %arg11: memref<2x2x32xf32, #tpu.memory_space<vmem>>, %arg12: memref<2x2x32xf32, #tpu.memory_space<vmem>>, %arg13: memref<16x32xf32, #tpu.memory_space<vmem>>, %arg14: memref<16x32xf32, #tpu.memory_space<vmem>>) attributes {dimension_semantics = [], scalar_prefetch = 0 : i64, scratch_operands = 2 : i64, tpu.core_type = #tpu.core_type<tc>} {
    %c0 = arith.constant 0 : index
    %c0_0 = arith.constant 0 : index
    %0 = memref.load %arg0[%c0, %c0_0] : memref<2x8xi32, #tpu.memory_space<smem>>
    %1 = arith.index_cast %0 : i32 to index
    %c0_1 = arith.constant 0 : index
    %2 = vector.load %arg1[%1, %c0_1] : memref<64x32xf32, #tpu.memory_space<vmem>>, vector<1x32xf32>
    %c0_2 = arith.constant 0 : index
    %c0_3 = arith.constant 0 : index
    %3 = vector.load %arg13[%c0_2, %c0_3] : memref<16x32xf32, #tpu.memory_space<vmem>>, vector<1x32xf32>
    tpu.vector_store %arg13[%c0_2, %c0_3], %2 {strides = array<i32>} : memref<16x32xf32, #tpu.memory_space<vmem>>, vector<1x32xf32>,
    %c1 = arith.constant 1 : index
    %c0_4 = arith.constant 0 : index
    %4 = memref.load %arg0[%c1, %c0_4] : memref<2x8xi32, #tpu.memory_space<smem>>
    %5 = arith.index_cast %4 : i32 to index
    %c0_5 = arith.constant 0 : index
    %6 = vector.load %arg1[%5, %c0_5] : memref<64x32xf32, #tpu.memory_space<vmem>>, vector<1x32xf32>
    %c1_6 = arith.constant 1 : index
    %c0_7 = arith.constant 0 : index
    %7 = vector.load %arg13[%c1_6, %c0_7] : memref<16x32xf32, #tpu.memory_space<vmem>>, vector<1x32xf32>
    tpu.vector_store %arg13[%c1_6, %c0_7], %6 {strides = array<i32>} : memref<16x32xf32, #tpu.memory_space<vmem>>, vector<1x32xf32>,
    %c0_8 = arith.constant 0 : index
    %c1_9 = arith.constant 1 : index
    %8 = memref.load %arg0[%c0_8, %c1_9] : memref<2x8xi32, #tpu.memory_space<smem>>
    %9 = arith.index_cast %8 : i32 to index
    %c0_10 = arith.constant 0 : index
    %10 = vector.load %arg1[%9, %c0_10] : memref<64x32xf32, #tpu.memory_space<vmem>>, vector<1x32xf32>
    %c2 = arith.constant 2 : index
    %c0_11 = arith.constant 0 : index
    %11 = vector.load %arg13[%c2, %c0_11] : memref<16x32xf32, #tpu.memory_space<vmem>>, vector<1x32xf32>
    tpu.vector_store %arg13[%c2, %c0_11], %10 {strides = array<i32>} : memref<16x32xf32, #tpu.memory_space<vmem>>, vector<1x32xf32>,
    %c1_12 = arith.constant 1 : index
    %c1_13 = arith.constant 1 : index
    %12 = memref.load %arg0[%c1_12, %c1_13] : memref<2x8xi32, #tpu.memory_space<smem>>
    %13 = arith.index_cast %12 : i32 to index
    %c0_14 = arith.constant 0 : index
    %14 = vector.load %arg1[%13, %c0_14] : memref<64x32xf32, #tpu.memory_space<vmem>>, vector<1x32xf32>
    %c3 = arith.constant 3 : index
    %c0_15 = arith.constant 0 : index
    %15 = vector.load %arg13[%c3, %c0_15] : memref<16x32xf32, #tpu.memory_space<vmem>>, vector<1x32xf32>
    tpu.vector_store %arg13[%c3, %c0_15], %14 {strides = array<i32>} : memref<16x32xf32, #tpu.memory_space<vmem>>, vector<1x32xf32>,
    %c0_16 = arith.constant 0 : index
    %c2_17 = arith.constant 2 : index
    %16 = memref.load %arg0[%c0_16, %c2_17] : memref<2x8xi32, #tpu.memory_space<smem>>
    %17 = arith.index_cast %16 : i32 to index
    %c0_18 = arith.constant 0 : index
    %18 = vector.load %arg1[%17, %c0_18] : memref<64x32xf32, #tpu.memory_space<vmem>>, vector<1x32xf32>
    %c4 = arith.constant 4 : index
    %c0_19 = arith.constant 0 : index
    %19 = vector.load %arg13[%c4, %c0_19] : memref<16x32xf32, #tpu.memory_space<vmem>>, vector<1x32xf32>
    tpu.vector_store %arg13[%c4, %c0_19], %18 {strides = array<i32>} : memref<16x32xf32, #tpu.memory_space<vmem>>, vector<1x32xf32>,
    %c1_20 = arith.constant 1 : index
    %c2_21 = arith.constant 2 : index
    %20 = memref.load %arg0[%c1_20, %c2_21] : memref<2x8xi32, #tpu.memory_space<smem>>
    %21 = arith.index_cast %20 : i32 to index
    %c0_22 = arith.constant 0 : index
    %22 = vector.load %arg1[%21, %c0_22] : memref<64x32xf32, #tpu.memory_space<vmem>>, vector<1x32xf32>
    %c5 = arith.constant 5 : index
    %c0_23 = arith.constant 0 : index
    %23 = vector.load %arg13[%c5, %c0_23] : memref<16x32xf32, #tpu.memory_space<vmem>>, vector<1x32xf32>
    tpu.vector_store %arg13[%c5, %c0_23], %22 {strides = array<i32>} : memref<16x32xf32, #tpu.memory_space<vmem>>, vector<1x32xf32>,
    %c0_24 = arith.constant 0 : index
    %c3_25 = arith.constant 3 : index
    %24 = memref.load %arg0[%c0_24, %c3_25] : memref<2x8xi32, #tpu.memory_space<smem>>
    %25 = arith.index_cast %24 : i32 to index
    %c0_26 = arith.constant 0 : index
    %26 = vector.load %arg1[%25, %c0_26] : memref<64x32xf32, #tpu.memory_space<vmem>>, vector<1x32xf32>
    %c6 = arith.constant 6 : index
    %c0_27 = arith.constant 0 : index
    %27 = vector.load %arg13[%c6, %c0_27] : memref<16x32xf32, #tpu.memory_space<vmem>>, vector<1x32xf32>
    tpu.vector_store %arg13[%c6, %c0_27], %26 {strides = array<i32>} : memref<16x32xf32, #tpu.memory_space<vmem>>, vector<1x32xf32>,
    %c1_28 = arith.constant 1 : index
    %c3_29 = arith.constant 3 : index
    %28 = memref.load %arg0[%c1_28, %c3_29] : memref<2x8xi32, #tpu.memory_space<smem>>
    %29 = arith.index_cast %28 : i32 to index
    %c0_30 = arith.constant 0 : index
    %30 = vector.load %arg1[%29, %c0_30] : memref<64x32xf32, #tpu.memory_space<vmem>>, vector<1x32xf32>
    %c7 = arith.constant 7 : index
    %c0_31 = arith.constant 0 : index
    %31 = vector.load %arg13[%c7, %c0_31] : memref<16x32xf32, #tpu.memory_space<vmem>>, vector<1x32xf32>
    tpu.vector_store %arg13[%c7, %c0_31], %30 {strides = array<i32>} : memref<16x32xf32, #tpu.memory_space<vmem>>, vector<1x32xf32>,
    %c0_32 = arith.constant 0 : index
    %c4_33 = arith.constant 4 : index
    %32 = memref.load %arg0[%c0_32, %c4_33] : memref<2x8xi32, #tpu.memory_space<smem>>
    %33 = arith.index_cast %32 : i32 to index
    %c0_34 = arith.constant 0 : index
    %34 = vector.load %arg1[%33, %c0_34] : memref<64x32xf32, #tpu.memory_space<vmem>>, vector<1x32xf32>
    %c8 = arith.constant 8 : index
    %c0_35 = arith.constant 0 : index
    %35 = vector.load %arg13[%c8, %c0_35] : memref<16x32xf32, #tpu.memory_space<vmem>>, vector<1x32xf32>
    tpu.vector_store %arg13[%c8, %c0_35], %34 {strides = array<i32>} : memref<16x32xf32, #tpu.memory_space<vmem>>, vector<1x32xf32>,
    %c1_36 = arith.constant 1 : index
    %c4_37 = arith.constant 4 : index
    %36 = memref.load %arg0[%c1_36, %c4_37] : memref<2x8xi32, #tpu.memory_space<smem>>
    %37 = arith.index_cast %36 : i32 to index
    %c0_38 = arith.constant 0 : index
    %38 = vector.load %arg1[%37, %c0_38] : memref<64x32xf32, #tpu.memory_space<vmem>>, vector<1x32xf32>
    %c9 = arith.constant 9 : index
    %c0_39 = arith.constant 0 : index
    %39 = vector.load %arg13[%c9, %c0_39] : memref<16x32xf32, #tpu.memory_space<vmem>>, vector<1x32xf32>
    tpu.vector_store %arg13[%c9, %c0_39], %38 {strides = array<i32>} : memref<16x32xf32, #tpu.memory_space<vmem>>, vector<1x32xf32>,
    %c0_40 = arith.constant 0 : index
    %c5_41 = arith.constant 5 : index
    %40 = memref.load %arg0[%c0_40, %c5_41] : memref<2x8xi32, #tpu.memory_space<smem>>
    %41 = arith.index_cast %40 : i32 to index
    %c0_42 = arith.constant 0 : index
    %42 = vector.load %arg1[%41, %c0_42] : memref<64x32xf32, #tpu.memory_space<vmem>>, vector<1x32xf32>
    %c10 = arith.constant 10 : index
    %c0_43 = arith.constant 0 : index
    %43 = vector.load %arg13[%c10, %c0_43] : memref<16x32xf32, #tpu.memory_space<vmem>>, vector<1x32xf32>
    tpu.vector_store %arg13[%c10, %c0_43], %42 {strides = array<i32>} : memref<16x32xf32, #tpu.memory_space<vmem>>, vector<1x32xf32>,
    %c1_44 = arith.constant 1 : index
    %c5_45 = arith.constant 5 : index
    %44 = memref.load %arg0[%c1_44, %c5_45] : memref<2x8xi32, #tpu.memory_space<smem>>
    %45 = arith.index_cast %44 : i32 to index
    %c0_46 = arith.constant 0 : index
    %46 = vector.load %arg1[%45, %c0_46] : memref<64x32xf32, #tpu.memory_space<vmem>>, vector<1x32xf32>
    %c11 = arith.constant 11 : index
    %c0_47 = arith.constant 0 : index
    %47 = vector.load %arg13[%c11, %c0_47] : memref<16x32xf32, #tpu.memory_space<vmem>>, vector<1x32xf32>
    tpu.vector_store %arg13[%c11, %c0_47], %46 {strides = array<i32>} : memref<16x32xf32, #tpu.memory_space<vmem>>, vector<1x32xf32>,
    %c0_48 = arith.constant 0 : index
    %c6_49 = arith.constant 6 : index
    %48 = memref.load %arg0[%c0_48, %c6_49] : memref<2x8xi32, #tpu.memory_space<smem>>
    %49 = arith.index_cast %48 : i32 to index
    %c0_50 = arith.constant 0 : index
    %50 = vector.load %arg1[%49, %c0_50] : memref<64x32xf32, #tpu.memory_space<vmem>>, vector<1x32xf32>
    %c12 = arith.constant 12 : index
    %c0_51 = arith.constant 0 : index
    %51 = vector.load %arg13[%c12, %c0_51] : memref<16x32xf32, #tpu.memory_space<vmem>>, vector<1x32xf32>
    tpu.vector_store %arg13[%c12, %c0_51], %50 {strides = array<i32>} : memref<16x32xf32, #tpu.memory_space<vmem>>, vector<1x32xf32>,
    %c1_52 = arith.constant 1 : index
    %c6_53 = arith.constant 6 : index
    %52 = memref.load %arg0[%c1_52, %c6_53] : memref<2x8xi32, #tpu.memory_space<smem>>
    %53 = arith.index_cast %52 : i32 to index
    %c0_54 = arith.constant 0 : index
    %54 = vector.load %arg1[%53, %c0_54] : memref<64x32xf32, #tpu.memory_space<vmem>>, vector<1x32xf32>
    %c13 = arith.constant 13 : index
    %c0_55 = arith.constant 0 : index
    %55 = vector.load %arg13[%c13, %c0_55] : memref<16x32xf32, #tpu.memory_space<vmem>>, vector<1x32xf32>
    tpu.vector_store %arg13[%c13, %c0_55], %54 {strides = array<i32>} : memref<16x32xf32, #tpu.memory_space<vmem>>, vector<1x32xf32>,
    %c0_56 = arith.constant 0 : index
    %c7_57 = arith.constant 7 : index
    %56 = memref.load %arg0[%c0_56, %c7_57] : memref<2x8xi32, #tpu.memory_space<smem>>
    %57 = arith.index_cast %56 : i32 to index
    %c0_58 = arith.constant 0 : index
    %58 = vector.load %arg1[%57, %c0_58] : memref<64x32xf32, #tpu.memory_space<vmem>>, vector<1x32xf32>
    %c14 = arith.constant 14 : index
    %c0_59 = arith.constant 0 : index
    %59 = vector.load %arg13[%c14, %c0_59] : memref<16x32xf32, #tpu.memory_space<vmem>>, vector<1x32xf32>
    tpu.vector_store %arg13[%c14, %c0_59], %58 {strides = array<i32>} : memref<16x32xf32, #tpu.memory_space<vmem>>, vector<1x32xf32>,
    %c1_60 = arith.constant 1 : index
    %c7_61 = arith.constant 7 : index
    %60 = memref.load %arg0[%c1_60, %c7_61] : memref<2x8xi32, #tpu.memory_space<smem>>
    %61 = arith.index_cast %60 : i32 to index
    %c0_62 = arith.constant 0 : index
    %62 = vector.load %arg1[%61, %c0_62] : memref<64x32xf32, #tpu.memory_space<vmem>>, vector<1x32xf32>
    %c15 = arith.constant 15 : index
    %c0_63 = arith.constant 0 : index
    %63 = vector.load %arg13[%c15, %c0_63] : memref<16x32xf32, #tpu.memory_space<vmem>>, vector<1x32xf32>
    tpu.vector_store %arg13[%c15, %c0_63], %62 {strides = array<i32>} : memref<16x32xf32, #tpu.memory_space<vmem>>, vector<1x32xf32>,
    %c0_64 = arith.constant 0 : index
    %c0_65 = arith.constant 0 : index
    %64 = vector.load %arg3[%c0_64, %c0_65] : memref<32x128xf32, #tpu.memory_space<vmem>>, vector<32x128xf32>
    %c0_66 = arith.constant 0 : index
    %c0_67 = arith.constant 0 : index
    %65 = vector.load %arg5[%c0_66, %c0_67] : memref<32x128xf32, #tpu.memory_space<vmem>>, vector<32x128xf32>
    %c0_68 = arith.constant 0 : index
    %c0_69 = arith.constant 0 : index
    %66 = vector.load %arg6[%c0_68, %c0_69] : memref<32x128xf32, #tpu.memory_space<vmem>>, vector<32x128xf32>
    %c0_70 = arith.constant 0 : index
    %c0_71 = arith.constant 0 : index
    %67 = vector.load %arg7[%c0_70, %c0_71] : memref<1x128xf32, #tpu.memory_space<vmem>>, vector<1x128xf32>
    %68 = vector.shape_cast %67 : vector<1x128xf32> to vector<1x128xf32>
    %69 = vector.broadcast %68 : vector<1x128xf32> to vector<2x128xf32>
    %c0_72 = arith.constant 0 : index
    %c0_73 = arith.constant 0 : index
    %70 = vector.load %arg13[%c0_72, %c0_73] : memref<16x32xf32, #tpu.memory_space<vmem>>, vector<16x32xf32>
    %c0_74 = arith.constant 0 : index
    %c0_75 = arith.constant 0 : index
    %71 = vector.load %arg2[%c0_74, %c0_75] : memref<32x128xf32, #tpu.memory_space<vmem>>, vector<32x128xf32>
    %cst = arith.constant dense<0.000000e+00> : vector<16x128xf32>
    %72 = tpu.matmul %70, %71, %cst {dimension_numbers = #tpu.dot_dimension_numbers<[1], [0], [0], [1], [0, 0, 1, 1], [], []>} : vector<16x32xf32>, vector<32x128xf32>, vector<16x128xf32> -> vector<16x128xf32>
    %c0_76 = arith.constant 0 : index
    %c0_77 = arith.constant 0 : index
    %73 = vector.load %arg4[%c0_76, %c0_77] : memref<1x128xf32, #tpu.memory_space<vmem>>, vector<1x128xf32>
    %74 = vector.broadcast %73 : vector<1x128xf32> to vector<16x128xf32>
    %75 = arith.addf %72, %74 : vector<16x128xf32>
    %cst_78 = arith.constant 0.000000e+00 : f32
    %76 = vector.broadcast %cst_78 : f32 to vector<2x32xf32>
    %cst_79 = arith.constant 0.000000e+00 : f32
    %77 = vector.broadcast %cst_79 : f32 to vector<2x32xf32>
    %cst_80 = arith.constant 0.000000e+00 : f32
    %78 = vector.broadcast %cst_80 : f32 to vector<2x32xf32>
    %cst_81 = arith.constant 0.000000e+00 : f32
    %79 = vector.broadcast %cst_81 : f32 to vector<2x32xf32>
    %80 = vector.extract_strided_slice %75 {offsets = [0, 0], sizes = [2, 128], strides = [1, 1]} : vector<16x128xf32> to vector<2x128xf32>
    %cst_82 = arith.constant dense<0.000000e+00> : vector<2x128xf32>
    %81 = tpu.matmul %76, %64, %cst_82 {dimension_numbers = #tpu.dot_dimension_numbers<[1], [0], [0], [1], [0, 0, 1, 1], [], []>} : vector<2x32xf32>, vector<32x128xf32>, vector<2x128xf32> -> vector<2x128xf32>
    %82 = arith.addf %80, %81 : vector<2x128xf32>
    %83 = arith.negf %82 : vector<2x128xf32>
    %84 = math.exp %83 : vector<2x128xf32>
    %cst_83 = arith.constant 1.000000e+00 : f32
    %85 = vector.broadcast %cst_83 : f32 to vector<2x128xf32>
    %86 = arith.addf %85, %84 : vector<2x128xf32>
    %87 = arith.divf %85, %86 : vector<2x128xf32>
    %88 = math.tanh %82 : vector<2x128xf32>
    %89 = vector.extract_strided_slice %87 {offsets = [0, 0], sizes = [2, 32], strides = [1, 1]} : vector<2x128xf32> to vector<2x32xf32>
    %90 = vector.extract_strided_slice %87 {offsets = [0, 32], sizes = [2, 32], strides = [1, 1]} : vector<2x128xf32> to vector<2x32xf32>
    %91 = vector.extract_strided_slice %88 {offsets = [0, 64], sizes = [2, 32], strides = [1, 1]} : vector<2x128xf32> to vector<2x32xf32>
    %92 = vector.extract_strided_slice %87 {offsets = [0, 96], sizes = [2, 32], strides = [1, 1]} : vector<2x128xf32> to vector<2x32xf32>
    %93 = arith.mulf %90, %77 : vector<2x32xf32>
    %94 = arith.mulf %89, %91 : vector<2x32xf32>
    %95 = arith.addf %93, %94 : vector<2x32xf32>
    %96 = math.tanh %95 : vector<2x32xf32>
    %97 = arith.mulf %92, %96 : vector<2x32xf32>
    %cst_84 = arith.constant dense<0.000000e+00> : vector<2x128xf32>
    %98 = tpu.matmul %97, %65, %cst_84 {dimension_numbers = #tpu.dot_dimension_numbers<[1], [0], [0], [1], [0, 0, 1, 1], [], []>} : vector<2x32xf32>, vector<32x128xf32>, vector<2x128xf32> -> vector<2x128xf32>
    %cst_85 = arith.constant dense<0.000000e+00> : vector<2x128xf32>
    %99 = tpu.matmul %78, %66, %cst_85 {dimension_numbers = #tpu.dot_dimension_numbers<[1], [0], [0], [1], [0, 0, 1, 1], [], []>} : vector<2x32xf32>, vector<32x128xf32>, vector<2x128xf32> -> vector<2x128xf32>
    %100 = arith.addf %98, %99 : vector<2x128xf32>
    %101 = arith.addf %100, %69 : vector<2x128xf32>
    %102 = arith.negf %101 : vector<2x128xf32>
    %103 = math.exp %102 : vector<2x128xf32>
    %cst_86 = arith.constant 1.000000e+00 : f32
    %104 = vector.broadcast %cst_86 : f32 to vector<2x128xf32>
    %105 = arith.addf %104, %103 : vector<2x128xf32>
    %106 = arith.divf %104, %105 : vector<2x128xf32>
    %107 = math.tanh %101 : vector<2x128xf32>
    %108 = vector.extract_strided_slice %106 {offsets = [0, 0], sizes = [2, 32], strides = [1, 1]} : vector<2x128xf32> to vector<2x32xf32>
    %109 = vector.extract_strided_slice %106 {offsets = [0, 32], sizes = [2, 32], strides = [1, 1]} : vector<2x128xf32> to vector<2x32xf32>
    %110 = vector.extract_strided_slice %107 {offsets = [0, 64], sizes = [2, 32], strides = [1, 1]} : vector<2x128xf32> to vector<2x32xf32>
    %111 = vector.extract_strided_slice %106 {offsets = [0, 96], sizes = [2, 32], strides = [1, 1]} : vector<2x128xf32> to vector<2x32xf32>
    %112 = arith.mulf %109, %79 : vector<2x32xf32>
    %113 = arith.mulf %108, %110 : vector<2x32xf32>
    %114 = arith.addf %112, %113 : vector<2x32xf32>
    %115 = math.tanh %114 : vector<2x32xf32>
    %116 = arith.mulf %111, %115 : vector<2x32xf32>
    %117 = vector.extract_strided_slice %116 {offsets = [0, 0], sizes = [1, 32], strides = [1, 1]} : vector<2x32xf32> to vector<1x32xf32>
    %c0_87 = arith.constant 0 : index
    %c0_88 = arith.constant 0 : index
    %118 = vector.load %arg14[%c0_87, %c0_88] : memref<16x32xf32, #tpu.memory_space<vmem>>, vector<1x32xf32>
    tpu.vector_store %arg14[%c0_87, %c0_88], %117 {strides = array<i32>} : memref<16x32xf32, #tpu.memory_space<vmem>>, vector<1x32xf32>,
    %119 = vector.extract_strided_slice %116 {offsets = [1, 0], sizes = [1, 32], strides = [1, 1]} : vector<2x32xf32> to vector<1x32xf32>
    %c8_89 = arith.constant 8 : index
    %c0_90 = arith.constant 0 : index
    %120 = vector.load %arg14[%c8_89, %c0_90] : memref<16x32xf32, #tpu.memory_space<vmem>>, vector<1x32xf32>
    tpu.vector_store %arg14[%c8_89, %c0_90], %119 {strides = array<i32>} : memref<16x32xf32, #tpu.memory_space<vmem>>, vector<1x32xf32>,
    %121 = vector.extract_strided_slice %75 {offsets = [2, 0], sizes = [2, 128], strides = [1, 1]} : vector<16x128xf32> to vector<2x128xf32>
    %cst_91 = arith.constant dense<0.000000e+00> : vector<2x128xf32>
    %122 = tpu.matmul %97, %64, %cst_91 {dimension_numbers = #tpu.dot_dimension_numbers<[1], [0], [0], [1], [0, 0, 1, 1], [], []>} : vector<2x32xf32>, vector<32x128xf32>, vector<2x128xf32> -> vector<2x128xf32>
    %123 = arith.addf %121, %122 : vector<2x128xf32>
    %124 = arith.negf %123 : vector<2x128xf32>
    %125 = math.exp %124 : vector<2x128xf32>
    %cst_92 = arith.constant 1.000000e+00 : f32
    %126 = vector.broadcast %cst_92 : f32 to vector<2x128xf32>
    %127 = arith.addf %126, %125 : vector<2x128xf32>
    %128 = arith.divf %126, %127 : vector<2x128xf32>
    %129 = math.tanh %123 : vector<2x128xf32>
    %130 = vector.extract_strided_slice %128 {offsets = [0, 0], sizes = [2, 32], strides = [1, 1]} : vector<2x128xf32> to vector<2x32xf32>
    %131 = vector.extract_strided_slice %128 {offsets = [0, 32], sizes = [2, 32], strides = [1, 1]} : vector<2x128xf32> to vector<2x32xf32>
    %132 = vector.extract_strided_slice %129 {offsets = [0, 64], sizes = [2, 32], strides = [1, 1]} : vector<2x128xf32> to vector<2x32xf32>
    %133 = vector.extract_strided_slice %128 {offsets = [0, 96], sizes = [2, 32], strides = [1, 1]} : vector<2x128xf32> to vector<2x32xf32>
    %134 = arith.mulf %131, %95 : vector<2x32xf32>
    %135 = arith.mulf %130, %132 : vector<2x32xf32>
    %136 = arith.addf %134, %135 : vector<2x32xf32>
    %137 = math.tanh %136 : vector<2x32xf32>
    %138 = arith.mulf %133, %137 : vector<2x32xf32>
    %cst_93 = arith.constant dense<0.000000e+00> : vector<2x128xf32>
    %139 = tpu.matmul %138, %65, %cst_93 {dimension_numbers = #tpu.dot_dimension_numbers<[1], [0], [0], [1], [0, 0, 1, 1], [], []>} : vector<2x32xf32>, vector<32x128xf32>, vector<2x128xf32> -> vector<2x128xf32>
    %cst_94 = arith.constant dense<0.000000e+00> : vector<2x128xf32>
    %140 = tpu.matmul %116, %66, %cst_94 {dimension_numbers = #tpu.dot_dimension_numbers<[1], [0], [0], [1], [0, 0, 1, 1], [], []>} : vector<2x32xf32>, vector<32x128xf32>, vector<2x128xf32> -> vector<2x128xf32>
    %141 = arith.addf %139, %140 : vector<2x128xf32>
    %142 = arith.addf %141, %69 : vector<2x128xf32>
    %143 = arith.negf %142 : vector<2x128xf32>
    %144 = math.exp %143 : vector<2x128xf32>
    %cst_95 = arith.constant 1.000000e+00 : f32
    %145 = vector.broadcast %cst_95 : f32 to vector<2x128xf32>
    %146 = arith.addf %145, %144 : vector<2x128xf32>
    %147 = arith.divf %145, %146 : vector<2x128xf32>
    %148 = math.tanh %142 : vector<2x128xf32>
    %149 = vector.extract_strided_slice %147 {offsets = [0, 0], sizes = [2, 32], strides = [1, 1]} : vector<2x128xf32> to vector<2x32xf32>
    %150 = vector.extract_strided_slice %147 {offsets = [0, 32], sizes = [2, 32], strides = [1, 1]} : vector<2x128xf32> to vector<2x32xf32>
    %151 = vector.extract_strided_slice %148 {offsets = [0, 64], sizes = [2, 32], strides = [1, 1]} : vector<2x128xf32> to vector<2x32xf32>
    %152 = vector.extract_strided_slice %147 {offsets = [0, 96], sizes = [2, 32], strides = [1, 1]} : vector<2x128xf32> to vector<2x32xf32>
    %153 = arith.mulf %150, %114 : vector<2x32xf32>
    %154 = arith.mulf %149, %151 : vector<2x32xf32>
    %155 = arith.addf %153, %154 : vector<2x32xf32>
    %156 = math.tanh %155 : vector<2x32xf32>
    %157 = arith.mulf %152, %156 : vector<2x32xf32>
    %158 = vector.extract_strided_slice %157 {offsets = [0, 0], sizes = [1, 32], strides = [1, 1]} : vector<2x32xf32> to vector<1x32xf32>
    %c1_96 = arith.constant 1 : index
    %c0_97 = arith.constant 0 : index
    %159 = vector.load %arg14[%c1_96, %c0_97] : memref<16x32xf32, #tpu.memory_space<vmem>>, vector<1x32xf32>
    tpu.vector_store %arg14[%c1_96, %c0_97], %158 {strides = array<i32>} : memref<16x32xf32, #tpu.memory_space<vmem>>, vector<1x32xf32>,
    %160 = vector.extract_strided_slice %157 {offsets = [1, 0], sizes = [1, 32], strides = [1, 1]} : vector<2x32xf32> to vector<1x32xf32>
    %c9_98 = arith.constant 9 : index
    %c0_99 = arith.constant 0 : index
    %161 = vector.load %arg14[%c9_98, %c0_99] : memref<16x32xf32, #tpu.memory_space<vmem>>, vector<1x32xf32>
    tpu.vector_store %arg14[%c9_98, %c0_99], %160 {strides = array<i32>} : memref<16x32xf32, #tpu.memory_space<vmem>>, vector<1x32xf32>,
    %162 = vector.extract_strided_slice %75 {offsets = [4, 0], sizes = [2, 128], strides = [1, 1]} : vector<16x128xf32> to vector<2x128xf32>
    %cst_100 = arith.constant dense<0.000000e+00> : vector<2x128xf32>
    %163 = tpu.matmul %138, %64, %cst_100 {dimension_numbers = #tpu.dot_dimension_numbers<[1], [0], [0], [1], [0, 0, 1, 1], [], []>} : vector<2x32xf32>, vector<32x128xf32>, vector<2x128xf32> -> vector<2x128xf32>
    %164 = arith.addf %162, %163 : vector<2x128xf32>
    %165 = arith.negf %164 : vector<2x128xf32>
    %166 = math.exp %165 : vector<2x128xf32>
    %cst_101 = arith.constant 1.000000e+00 : f32
    %167 = vector.broadcast %cst_101 : f32 to vector<2x128xf32>
    %168 = arith.addf %167, %166 : vector<2x128xf32>
    %169 = arith.divf %167, %168 : vector<2x128xf32>
    %170 = math.tanh %164 : vector<2x128xf32>
    %171 = vector.extract_strided_slice %169 {offsets = [0, 0], sizes = [2, 32], strides = [1, 1]} : vector<2x128xf32> to vector<2x32xf32>
    %172 = vector.extract_strided_slice %169 {offsets = [0, 32], sizes = [2, 32], strides = [1, 1]} : vector<2x128xf32> to vector<2x32xf32>
    %173 = vector.extract_strided_slice %170 {offsets = [0, 64], sizes = [2, 32], strides = [1, 1]} : vector<2x128xf32> to vector<2x32xf32>
    %174 = vector.extract_strided_slice %169 {offsets = [0, 96], sizes = [2, 32], strides = [1, 1]} : vector<2x128xf32> to vector<2x32xf32>
    %175 = arith.mulf %172, %136 : vector<2x32xf32>
    %176 = arith.mulf %171, %173 : vector<2x32xf32>
    %177 = arith.addf %175, %176 : vector<2x32xf32>
    %178 = math.tanh %177 : vector<2x32xf32>
    %179 = arith.mulf %174, %178 : vector<2x32xf32>
    %cst_102 = arith.constant dense<0.000000e+00> : vector<2x128xf32>
    %180 = tpu.matmul %179, %65, %cst_102 {dimension_numbers = #tpu.dot_dimension_numbers<[1], [0], [0], [1], [0, 0, 1, 1], [], []>} : vector<2x32xf32>, vector<32x128xf32>, vector<2x128xf32> -> vector<2x128xf32>
    %cst_103 = arith.constant dense<0.000000e+00> : vector<2x128xf32>
    %181 = tpu.matmul %157, %66, %cst_103 {dimension_numbers = #tpu.dot_dimension_numbers<[1], [0], [0], [1], [0, 0, 1, 1], [], []>} : vector<2x32xf32>, vector<32x128xf32>, vector<2x128xf32> -> vector<2x128xf32>
    %182 = arith.addf %180, %181 : vector<2x128xf32>
    %183 = arith.addf %182, %69 : vector<2x128xf32>
    %184 = arith.negf %183 : vector<2x128xf32>
    %185 = math.exp %184 : vector<2x128xf32>
    %cst_104 = arith.constant 1.000000e+00 : f32
    %186 = vector.broadcast %cst_104 : f32 to vector<2x128xf32>
    %187 = arith.addf %186, %185 : vector<2x128xf32>
    %188 = arith.divf %186, %187 : vector<2x128xf32>
    %189 = math.tanh %183 : vector<2x128xf32>
    %190 = vector.extract_strided_slice %188 {offsets = [0, 0], sizes = [2, 32], strides = [1, 1]} : vector<2x128xf32> to vector<2x32xf32>
    %191 = vector.extract_strided_slice %188 {offsets = [0, 32], sizes = [2, 32], strides = [1, 1]} : vector<2x128xf32> to vector<2x32xf32>
    %192 = vector.extract_strided_slice %189 {offsets = [0, 64], sizes = [2, 32], strides = [1, 1]} : vector<2x128xf32> to vector<2x32xf32>
    %193 = vector.extract_strided_slice %188 {offsets = [0, 96], sizes = [2, 32], strides = [1, 1]} : vector<2x128xf32> to vector<2x32xf32>
    %194 = arith.mulf %191, %155 : vector<2x32xf32>
    %195 = arith.mulf %190, %192 : vector<2x32xf32>
    %196 = arith.addf %194, %195 : vector<2x32xf32>
    %197 = math.tanh %196 : vector<2x32xf32>
    %198 = arith.mulf %193, %197 : vector<2x32xf32>
    %199 = vector.extract_strided_slice %198 {offsets = [0, 0], sizes = [1, 32], strides = [1, 1]} : vector<2x32xf32> to vector<1x32xf32>
    %c2_105 = arith.constant 2 : index
    %c0_106 = arith.constant 0 : index
    %200 = vector.load %arg14[%c2_105, %c0_106] : memref<16x32xf32, #tpu.memory_space<vmem>>, vector<1x32xf32>
    tpu.vector_store %arg14[%c2_105, %c0_106], %199 {strides = array<i32>} : memref<16x32xf32, #tpu.memory_space<vmem>>, vector<1x32xf32>,
    %201 = vector.extract_strided_slice %198 {offsets = [1, 0], sizes = [1, 32], strides = [1, 1]} : vector<2x32xf32> to vector<1x32xf32>
    %c10_107 = arith.constant 10 : index
    %c0_108 = arith.constant 0 : index
    %202 = vector.load %arg14[%c10_107, %c0_108] : memref<16x32xf32, #tpu.memory_space<vmem>>, vector<1x32xf32>
    tpu.vector_store %arg14[%c10_107, %c0_108], %201 {strides = array<i32>} : memref<16x32xf32, #tpu.memory_space<vmem>>, vector<1x32xf32>,
    %203 = vector.extract_strided_slice %75 {offsets = [6, 0], sizes = [2, 128], strides = [1, 1]} : vector<16x128xf32> to vector<2x128xf32>
    %cst_109 = arith.constant dense<0.000000e+00> : vector<2x128xf32>
    %204 = tpu.matmul %179, %64, %cst_109 {dimension_numbers = #tpu.dot_dimension_numbers<[1], [0], [0], [1], [0, 0, 1, 1], [], []>} : vector<2x32xf32>, vector<32x128xf32>, vector<2x128xf32> -> vector<2x128xf32>
    %205 = arith.addf %203, %204 : vector<2x128xf32>
    %206 = arith.negf %205 : vector<2x128xf32>
    %207 = math.exp %206 : vector<2x128xf32>
    %cst_110 = arith.constant 1.000000e+00 : f32
    %208 = vector.broadcast %cst_110 : f32 to vector<2x128xf32>
    %209 = arith.addf %208, %207 : vector<2x128xf32>
    %210 = arith.divf %208, %209 : vector<2x128xf32>
    %211 = math.tanh %205 : vector<2x128xf32>
    %212 = vector.extract_strided_slice %210 {offsets = [0, 0], sizes = [2, 32], strides = [1, 1]} : vector<2x128xf32> to vector<2x32xf32>
    %213 = vector.extract_strided_slice %210 {offsets = [0, 32], sizes = [2, 32], strides = [1, 1]} : vector<2x128xf32> to vector<2x32xf32>
    %214 = vector.extract_strided_slice %211 {offsets = [0, 64], sizes = [2, 32], strides = [1, 1]} : vector<2x128xf32> to vector<2x32xf32>
    %215 = vector.extract_strided_slice %210 {offsets = [0, 96], sizes = [2, 32], strides = [1, 1]} : vector<2x128xf32> to vector<2x32xf32>
    %216 = arith.mulf %213, %177 : vector<2x32xf32>
    %217 = arith.mulf %212, %214 : vector<2x32xf32>
    %218 = arith.addf %216, %217 : vector<2x32xf32>
    %219 = math.tanh %218 : vector<2x32xf32>
    %220 = arith.mulf %215, %219 : vector<2x32xf32>
    %cst_111 = arith.constant dense<0.000000e+00> : vector<2x128xf32>
    %221 = tpu.matmul %220, %65, %cst_111 {dimension_numbers = #tpu.dot_dimension_numbers<[1], [0], [0], [1], [0, 0, 1, 1], [], []>} : vector<2x32xf32>, vector<32x128xf32>, vector<2x128xf32> -> vector<2x128xf32>
    %cst_112 = arith.constant dense<0.000000e+00> : vector<2x128xf32>
    %222 = tpu.matmul %198, %66, %cst_112 {dimension_numbers = #tpu.dot_dimension_numbers<[1], [0], [0], [1], [0, 0, 1, 1], [], []>} : vector<2x32xf32>, vector<32x128xf32>, vector<2x128xf32> -> vector<2x128xf32>
    %223 = arith.addf %221, %222 : vector<2x128xf32>
    %224 = arith.addf %223, %69 : vector<2x128xf32>
    %225 = arith.negf %224 : vector<2x128xf32>
    %226 = math.exp %225 : vector<2x128xf32>
    %cst_113 = arith.constant 1.000000e+00 : f32
    %227 = vector.broadcast %cst_113 : f32 to vector<2x128xf32>
    %228 = arith.addf %227, %226 : vector<2x128xf32>
    %229 = arith.divf %227, %228 : vector<2x128xf32>
    %230 = math.tanh %224 : vector<2x128xf32>
    %231 = vector.extract_strided_slice %229 {offsets = [0, 0], sizes = [2, 32], strides = [1, 1]} : vector<2x128xf32> to vector<2x32xf32>
    %232 = vector.extract_strided_slice %229 {offsets = [0, 32], sizes = [2, 32], strides = [1, 1]} : vector<2x128xf32> to vector<2x32xf32>
    %233 = vector.extract_strided_slice %230 {offsets = [0, 64], sizes = [2, 32], strides = [1, 1]} : vector<2x128xf32> to vector<2x32xf32>
    %234 = vector.extract_strided_slice %229 {offsets = [0, 96], sizes = [2, 32], strides = [1, 1]} : vector<2x128xf32> to vector<2x32xf32>
    %235 = arith.mulf %232, %196 : vector<2x32xf32>
    %236 = arith.mulf %231, %233 : vector<2x32xf32>
    %237 = arith.addf %235, %236 : vector<2x32xf32>
    %238 = math.tanh %237 : vector<2x32xf32>
    %239 = arith.mulf %234, %238 : vector<2x32xf32>
    %240 = vector.extract_strided_slice %239 {offsets = [0, 0], sizes = [1, 32], strides = [1, 1]} : vector<2x32xf32> to vector<1x32xf32>
    %c3_114 = arith.constant 3 : index
    %c0_115 = arith.constant 0 : index
    %241 = vector.load %arg14[%c3_114, %c0_115] : memref<16x32xf32, #tpu.memory_space<vmem>>, vector<1x32xf32>
    tpu.vector_store %arg14[%c3_114, %c0_115], %240 {strides = array<i32>} : memref<16x32xf32, #tpu.memory_space<vmem>>, vector<1x32xf32>,
    %242 = vector.extract_strided_slice %239 {offsets = [1, 0], sizes = [1, 32], strides = [1, 1]} : vector<2x32xf32> to vector<1x32xf32>
    %c11_116 = arith.constant 11 : index
    %c0_117 = arith.constant 0 : index
    %243 = vector.load %arg14[%c11_116, %c0_117] : memref<16x32xf32, #tpu.memory_space<vmem>>, vector<1x32xf32>
    tpu.vector_store %arg14[%c11_116, %c0_117], %242 {strides = array<i32>} : memref<16x32xf32, #tpu.memory_space<vmem>>, vector<1x32xf32>,
    %244 = vector.extract_strided_slice %75 {offsets = [8, 0], sizes = [2, 128], strides = [1, 1]} : vector<16x128xf32> to vector<2x128xf32>
    %cst_118 = arith.constant dense<0.000000e+00> : vector<2x128xf32>
    %245 = tpu.matmul %220, %64, %cst_118 {dimension_numbers = #tpu.dot_dimension_numbers<[1], [0], [0], [1], [0, 0, 1, 1], [], []>} : vector<2x32xf32>, vector<32x128xf32>, vector<2x128xf32> -> vector<2x128xf32>
    %246 = arith.addf %244, %245 : vector<2x128xf32>
    %247 = arith.negf %246 : vector<2x128xf32>
    %248 = math.exp %247 : vector<2x128xf32>
    %cst_119 = arith.constant 1.000000e+00 : f32
    %249 = vector.broadcast %cst_119 : f32 to vector<2x128xf32>
    %250 = arith.addf %249, %248 : vector<2x128xf32>
    %251 = arith.divf %249, %250 : vector<2x128xf32>
    %252 = math.tanh %246 : vector<2x128xf32>
    %253 = vector.extract_strided_slice %251 {offsets = [0, 0], sizes = [2, 32], strides = [1, 1]} : vector<2x128xf32> to vector<2x32xf32>
    %254 = vector.extract_strided_slice %251 {offsets = [0, 32], sizes = [2, 32], strides = [1, 1]} : vector<2x128xf32> to vector<2x32xf32>
    %255 = vector.extract_strided_slice %252 {offsets = [0, 64], sizes = [2, 32], strides = [1, 1]} : vector<2x128xf32> to vector<2x32xf32>
    %256 = vector.extract_strided_slice %251 {offsets = [0, 96], sizes = [2, 32], strides = [1, 1]} : vector<2x128xf32> to vector<2x32xf32>
    %257 = arith.mulf %254, %218 : vector<2x32xf32>
    %258 = arith.mulf %253, %255 : vector<2x32xf32>
    %259 = arith.addf %257, %258 : vector<2x32xf32>
    %260 = math.tanh %259 : vector<2x32xf32>
    %261 = arith.mulf %256, %260 : vector<2x32xf32>
    %cst_120 = arith.constant dense<0.000000e+00> : vector<2x128xf32>
    %262 = tpu.matmul %261, %65, %cst_120 {dimension_numbers = #tpu.dot_dimension_numbers<[1], [0], [0], [1], [0, 0, 1, 1], [], []>} : vector<2x32xf32>, vector<32x128xf32>, vector<2x128xf32> -> vector<2x128xf32>
    %cst_121 = arith.constant dense<0.000000e+00> : vector<2x128xf32>
    %263 = tpu.matmul %239, %66, %cst_121 {dimension_numbers = #tpu.dot_dimension_numbers<[1], [0], [0], [1], [0, 0, 1, 1], [], []>} : vector<2x32xf32>, vector<32x128xf32>, vector<2x128xf32> -> vector<2x128xf32>
    %264 = arith.addf %262, %263 : vector<2x128xf32>
    %265 = arith.addf %264, %69 : vector<2x128xf32>
    %266 = arith.negf %265 : vector<2x128xf32>
    %267 = math.exp %266 : vector<2x128xf32>
    %cst_122 = arith.constant 1.000000e+00 : f32
    %268 = vector.broadcast %cst_122 : f32 to vector<2x128xf32>
    %269 = arith.addf %268, %267 : vector<2x128xf32>
    %270 = arith.divf %268, %269 : vector<2x128xf32>
    %271 = math.tanh %265 : vector<2x128xf32>
    %272 = vector.extract_strided_slice %270 {offsets = [0, 0], sizes = [2, 32], strides = [1, 1]} : vector<2x128xf32> to vector<2x32xf32>
    %273 = vector.extract_strided_slice %270 {offsets = [0, 32], sizes = [2, 32], strides = [1, 1]} : vector<2x128xf32> to vector<2x32xf32>
    %274 = vector.extract_strided_slice %271 {offsets = [0, 64], sizes = [2, 32], strides = [1, 1]} : vector<2x128xf32> to vector<2x32xf32>
    %275 = vector.extract_strided_slice %270 {offsets = [0, 96], sizes = [2, 32], strides = [1, 1]} : vector<2x128xf32> to vector<2x32xf32>
    %276 = arith.mulf %273, %237 : vector<2x32xf32>
    %277 = arith.mulf %272, %274 : vector<2x32xf32>
    %278 = arith.addf %276, %277 : vector<2x32xf32>
    %279 = math.tanh %278 : vector<2x32xf32>
    %280 = arith.mulf %275, %279 : vector<2x32xf32>
    %281 = vector.extract_strided_slice %280 {offsets = [0, 0], sizes = [1, 32], strides = [1, 1]} : vector<2x32xf32> to vector<1x32xf32>
    %c4_123 = arith.constant 4 : index
    %c0_124 = arith.constant 0 : index
    %282 = vector.load %arg14[%c4_123, %c0_124] : memref<16x32xf32, #tpu.memory_space<vmem>>, vector<1x32xf32>
    tpu.vector_store %arg14[%c4_123, %c0_124], %281 {strides = array<i32>} : memref<16x32xf32, #tpu.memory_space<vmem>>, vector<1x32xf32>,
    %283 = vector.extract_strided_slice %280 {offsets = [1, 0], sizes = [1, 32], strides = [1, 1]} : vector<2x32xf32> to vector<1x32xf32>
    %c12_125 = arith.constant 12 : index
    %c0_126 = arith.constant 0 : index
    %284 = vector.load %arg14[%c12_125, %c0_126] : memref<16x32xf32, #tpu.memory_space<vmem>>, vector<1x32xf32>
    tpu.vector_store %arg14[%c12_125, %c0_126], %283 {strides = array<i32>} : memref<16x32xf32, #tpu.memory_space<vmem>>, vector<1x32xf32>,
    %285 = vector.extract_strided_slice %75 {offsets = [10, 0], sizes = [2, 128], strides = [1, 1]} : vector<16x128xf32> to vector<2x128xf32>
    %cst_127 = arith.constant dense<0.000000e+00> : vector<2x128xf32>
    %286 = tpu.matmul %261, %64, %cst_127 {dimension_numbers = #tpu.dot_dimension_numbers<[1], [0], [0], [1], [0, 0, 1, 1], [], []>} : vector<2x32xf32>, vector<32x128xf32>, vector<2x128xf32> -> vector<2x128xf32>
    %287 = arith.addf %285, %286 : vector<2x128xf32>
    %288 = arith.negf %287 : vector<2x128xf32>
    %289 = math.exp %288 : vector<2x128xf32>
    %cst_128 = arith.constant 1.000000e+00 : f32
    %290 = vector.broadcast %cst_128 : f32 to vector<2x128xf32>
    %291 = arith.addf %290, %289 : vector<2x128xf32>
    %292 = arith.divf %290, %291 : vector<2x128xf32>
    %293 = math.tanh %287 : vector<2x128xf32>
    %294 = vector.extract_strided_slice %292 {offsets = [0, 0], sizes = [2, 32], strides = [1, 1]} : vector<2x128xf32> to vector<2x32xf32>
    %295 = vector.extract_strided_slice %292 {offsets = [0, 32], sizes = [2, 32], strides = [1, 1]} : vector<2x128xf32> to vector<2x32xf32>
    %296 = vector.extract_strided_slice %293 {offsets = [0, 64], sizes = [2, 32], strides = [1, 1]} : vector<2x128xf32> to vector<2x32xf32>
    %297 = vector.extract_strided_slice %292 {offsets = [0, 96], sizes = [2, 32], strides = [1, 1]} : vector<2x128xf32> to vector<2x32xf32>
    %298 = arith.mulf %295, %259 : vector<2x32xf32>
    %299 = arith.mulf %294, %296 : vector<2x32xf32>
    %300 = arith.addf %298, %299 : vector<2x32xf32>
    %301 = math.tanh %300 : vector<2x32xf32>
    %302 = arith.mulf %297, %301 : vector<2x32xf32>
    %cst_129 = arith.constant dense<0.000000e+00> : vector<2x128xf32>
    %303 = tpu.matmul %302, %65, %cst_129 {dimension_numbers = #tpu.dot_dimension_numbers<[1], [0], [0], [1], [0, 0, 1, 1], [], []>} : vector<2x32xf32>, vector<32x128xf32>, vector<2x128xf32> -> vector<2x128xf32>
    %cst_130 = arith.constant dense<0.000000e+00> : vector<2x128xf32>
    %304 = tpu.matmul %280, %66, %cst_130 {dimension_numbers = #tpu.dot_dimension_numbers<[1], [0], [0], [1], [0, 0, 1, 1], [], []>} : vector<2x32xf32>, vector<32x128xf32>, vector<2x128xf32> -> vector<2x128xf32>
    %305 = arith.addf %303, %304 : vector<2x128xf32>
    %306 = arith.addf %305, %69 : vector<2x128xf32>
    %307 = arith.negf %306 : vector<2x128xf32>
    %308 = math.exp %307 : vector<2x128xf32>
    %cst_131 = arith.constant 1.000000e+00 : f32
    %309 = vector.broadcast %cst_131 : f32 to vector<2x128xf32>
    %310 = arith.addf %309, %308 : vector<2x128xf32>
    %311 = arith.divf %309, %310 : vector<2x128xf32>
    %312 = math.tanh %306 : vector<2x128xf32>
    %313 = vector.extract_strided_slice %311 {offsets = [0, 0], sizes = [2, 32], strides = [1, 1]} : vector<2x128xf32> to vector<2x32xf32>
    %314 = vector.extract_strided_slice %311 {offsets = [0, 32], sizes = [2, 32], strides = [1, 1]} : vector<2x128xf32> to vector<2x32xf32>
    %315 = vector.extract_strided_slice %312 {offsets = [0, 64], sizes = [2, 32], strides = [1, 1]} : vector<2x128xf32> to vector<2x32xf32>
    %316 = vector.extract_strided_slice %311 {offsets = [0, 96], sizes = [2, 32], strides = [1, 1]} : vector<2x128xf32> to vector<2x32xf32>
    %317 = arith.mulf %314, %278 : vector<2x32xf32>
    %318 = arith.mulf %313, %315 : vector<2x32xf32>
    %319 = arith.addf %317, %318 : vector<2x32xf32>
    %320 = math.tanh %319 : vector<2x32xf32>
    %321 = arith.mulf %316, %320 : vector<2x32xf32>
    %322 = vector.extract_strided_slice %321 {offsets = [0, 0], sizes = [1, 32], strides = [1, 1]} : vector<2x32xf32> to vector<1x32xf32>
    %c5_132 = arith.constant 5 : index
    %c0_133 = arith.constant 0 : index
    %323 = vector.load %arg14[%c5_132, %c0_133] : memref<16x32xf32, #tpu.memory_space<vmem>>, vector<1x32xf32>
    tpu.vector_store %arg14[%c5_132, %c0_133], %322 {strides = array<i32>} : memref<16x32xf32, #tpu.memory_space<vmem>>, vector<1x32xf32>,
    %324 = vector.extract_strided_slice %321 {offsets = [1, 0], sizes = [1, 32], strides = [1, 1]} : vector<2x32xf32> to vector<1x32xf32>
    %c13_134 = arith.constant 13 : index
    %c0_135 = arith.constant 0 : index
    %325 = vector.load %arg14[%c13_134, %c0_135] : memref<16x32xf32, #tpu.memory_space<vmem>>, vector<1x32xf32>
    tpu.vector_store %arg14[%c13_134, %c0_135], %324 {strides = array<i32>} : memref<16x32xf32, #tpu.memory_space<vmem>>, vector<1x32xf32>,
    %326 = vector.extract_strided_slice %75 {offsets = [12, 0], sizes = [2, 128], strides = [1, 1]} : vector<16x128xf32> to vector<2x128xf32>
    %cst_136 = arith.constant dense<0.000000e+00> : vector<2x128xf32>
    %327 = tpu.matmul %302, %64, %cst_136 {dimension_numbers = #tpu.dot_dimension_numbers<[1], [0], [0], [1], [0, 0, 1, 1], [], []>} : vector<2x32xf32>, vector<32x128xf32>, vector<2x128xf32> -> vector<2x128xf32>
    %328 = arith.addf %326, %327 : vector<2x128xf32>
    %329 = arith.negf %328 : vector<2x128xf32>
    %330 = math.exp %329 : vector<2x128xf32>
    %cst_137 = arith.constant 1.000000e+00 : f32
    %331 = vector.broadcast %cst_137 : f32 to vector<2x128xf32>
    %332 = arith.addf %331, %330 : vector<2x128xf32>
    %333 = arith.divf %331, %332 : vector<2x128xf32>
    %334 = math.tanh %328 : vector<2x128xf32>
    %335 = vector.extract_strided_slice %333 {offsets = [0, 0], sizes = [2, 32], strides = [1, 1]} : vector<2x128xf32> to vector<2x32xf32>
    %336 = vector.extract_strided_slice %333 {offsets = [0, 32], sizes = [2, 32], strides = [1, 1]} : vector<2x128xf32> to vector<2x32xf32>
    %337 = vector.extract_strided_slice %334 {offsets = [0, 64], sizes = [2, 32], strides = [1, 1]} : vector<2x128xf32> to vector<2x32xf32>
    %338 = vector.extract_strided_slice %333 {offsets = [0, 96], sizes = [2, 32], strides = [1, 1]} : vector<2x128xf32> to vector<2x32xf32>
    %339 = arith.mulf %336, %300 : vector<2x32xf32>
    %340 = arith.mulf %335, %337 : vector<2x32xf32>
    %341 = arith.addf %339, %340 : vector<2x32xf32>
    %342 = math.tanh %341 : vector<2x32xf32>
    %343 = arith.mulf %338, %342 : vector<2x32xf32>
    %cst_138 = arith.constant dense<0.000000e+00> : vector<2x128xf32>
    %344 = tpu.matmul %343, %65, %cst_138 {dimension_numbers = #tpu.dot_dimension_numbers<[1], [0], [0], [1], [0, 0, 1, 1], [], []>} : vector<2x32xf32>, vector<32x128xf32>, vector<2x128xf32> -> vector<2x128xf32>
    %cst_139 = arith.constant dense<0.000000e+00> : vector<2x128xf32>
    %345 = tpu.matmul %321, %66, %cst_139 {dimension_numbers = #tpu.dot_dimension_numbers<[1], [0], [0], [1], [0, 0, 1, 1], [], []>} : vector<2x32xf32>, vector<32x128xf32>, vector<2x128xf32> -> vector<2x128xf32>
    %346 = arith.addf %344, %345 : vector<2x128xf32>
    %347 = arith.addf %346, %69 : vector<2x128xf32>
    %348 = arith.negf %347 : vector<2x128xf32>
    %349 = math.exp %348 : vector<2x128xf32>
    %cst_140 = arith.constant 1.000000e+00 : f32
    %350 = vector.broadcast %cst_140 : f32 to vector<2x128xf32>
    %351 = arith.addf %350, %349 : vector<2x128xf32>
    %352 = arith.divf %350, %351 : vector<2x128xf32>
    %353 = math.tanh %347 : vector<2x128xf32>
    %354 = vector.extract_strided_slice %352 {offsets = [0, 0], sizes = [2, 32], strides = [1, 1]} : vector<2x128xf32> to vector<2x32xf32>
    %355 = vector.extract_strided_slice %352 {offsets = [0, 32], sizes = [2, 32], strides = [1, 1]} : vector<2x128xf32> to vector<2x32xf32>
    %356 = vector.extract_strided_slice %353 {offsets = [0, 64], sizes = [2, 32], strides = [1, 1]} : vector<2x128xf32> to vector<2x32xf32>
    %357 = vector.extract_strided_slice %352 {offsets = [0, 96], sizes = [2, 32], strides = [1, 1]} : vector<2x128xf32> to vector<2x32xf32>
    %358 = arith.mulf %355, %319 : vector<2x32xf32>
    %359 = arith.mulf %354, %356 : vector<2x32xf32>
    %360 = arith.addf %358, %359 : vector<2x32xf32>
    %361 = math.tanh %360 : vector<2x32xf32>
    %362 = arith.mulf %357, %361 : vector<2x32xf32>
    %363 = vector.extract_strided_slice %362 {offsets = [0, 0], sizes = [1, 32], strides = [1, 1]} : vector<2x32xf32> to vector<1x32xf32>
    %c6_141 = arith.constant 6 : index
    %c0_142 = arith.constant 0 : index
    %364 = vector.load %arg14[%c6_141, %c0_142] : memref<16x32xf32, #tpu.memory_space<vmem>>, vector<1x32xf32>
    tpu.vector_store %arg14[%c6_141, %c0_142], %363 {strides = array<i32>} : memref<16x32xf32, #tpu.memory_space<vmem>>, vector<1x32xf32>,
    %365 = vector.extract_strided_slice %362 {offsets = [1, 0], sizes = [1, 32], strides = [1, 1]} : vector<2x32xf32> to vector<1x32xf32>
    %c14_143 = arith.constant 14 : index
    %c0_144 = arith.constant 0 : index
    %366 = vector.load %arg14[%c14_143, %c0_144] : memref<16x32xf32, #tpu.memory_space<vmem>>, vector<1x32xf32>
    tpu.vector_store %arg14[%c14_143, %c0_144], %365 {strides = array<i32>} : memref<16x32xf32, #tpu.memory_space<vmem>>, vector<1x32xf32>,
    %367 = vector.extract_strided_slice %75 {offsets = [14, 0], sizes = [2, 128], strides = [1, 1]} : vector<16x128xf32> to vector<2x128xf32>
    %cst_145 = arith.constant dense<0.000000e+00> : vector<2x128xf32>
    %368 = tpu.matmul %343, %64, %cst_145 {dimension_numbers = #tpu.dot_dimension_numbers<[1], [0], [0], [1], [0, 0, 1, 1], [], []>} : vector<2x32xf32>, vector<32x128xf32>, vector<2x128xf32> -> vector<2x128xf32>
    %369 = arith.addf %367, %368 : vector<2x128xf32>
    %370 = arith.negf %369 : vector<2x128xf32>
    %371 = math.exp %370 : vector<2x128xf32>
    %cst_146 = arith.constant 1.000000e+00 : f32
    %372 = vector.broadcast %cst_146 : f32 to vector<2x128xf32>
    %373 = arith.addf %372, %371 : vector<2x128xf32>
    %374 = arith.divf %372, %373 : vector<2x128xf32>
    %375 = math.tanh %369 : vector<2x128xf32>
    %376 = vector.extract_strided_slice %374 {offsets = [0, 0], sizes = [2, 32], strides = [1, 1]} : vector<2x128xf32> to vector<2x32xf32>
    %377 = vector.extract_strided_slice %374 {offsets = [0, 32], sizes = [2, 32], strides = [1, 1]} : vector<2x128xf32> to vector<2x32xf32>
    %378 = vector.extract_strided_slice %375 {offsets = [0, 64], sizes = [2, 32], strides = [1, 1]} : vector<2x128xf32> to vector<2x32xf32>
    %379 = vector.extract_strided_slice %374 {offsets = [0, 96], sizes = [2, 32], strides = [1, 1]} : vector<2x128xf32> to vector<2x32xf32>
    %380 = arith.mulf %377, %341 : vector<2x32xf32>
    %381 = arith.mulf %376, %378 : vector<2x32xf32>
    %382 = arith.addf %380, %381 : vector<2x32xf32>
    %383 = math.tanh %382 : vector<2x32xf32>
    %384 = arith.mulf %379, %383 : vector<2x32xf32>
    %cst_147 = arith.constant dense<0.000000e+00> : vector<2x128xf32>
    %385 = tpu.matmul %384, %65, %cst_147 {dimension_numbers = #tpu.dot_dimension_numbers<[1], [0], [0], [1], [0, 0, 1, 1], [], []>} : vector<2x32xf32>, vector<32x128xf32>, vector<2x128xf32> -> vector<2x128xf32>
    %cst_148 = arith.constant dense<0.000000e+00> : vector<2x128xf32>
    %386 = tpu.matmul %362, %66, %cst_148 {dimension_numbers = #tpu.dot_dimension_numbers<[1], [0], [0], [1], [0, 0, 1, 1], [], []>} : vector<2x32xf32>, vector<32x128xf32>, vector<2x128xf32> -> vector<2x128xf32>
    %387 = arith.addf %385, %386 : vector<2x128xf32>
    %388 = arith.addf %387, %69 : vector<2x128xf32>
    %389 = arith.negf %388 : vector<2x128xf32>
    %390 = math.exp %389 : vector<2x128xf32>
    %cst_149 = arith.constant 1.000000e+00 : f32
    %391 = vector.broadcast %cst_149 : f32 to vector<2x128xf32>
    %392 = arith.addf %391, %390 : vector<2x128xf32>
    %393 = arith.divf %391, %392 : vector<2x128xf32>
    %394 = math.tanh %388 : vector<2x128xf32>
    %395 = vector.extract_strided_slice %393 {offsets = [0, 0], sizes = [2, 32], strides = [1, 1]} : vector<2x128xf32> to vector<2x32xf32>
    %396 = vector.extract_strided_slice %393 {offsets = [0, 32], sizes = [2, 32], strides = [1, 1]} : vector<2x128xf32> to vector<2x32xf32>
    %397 = vector.extract_strided_slice %394 {offsets = [0, 64], sizes = [2, 32], strides = [1, 1]} : vector<2x128xf32> to vector<2x32xf32>
    %398 = vector.extract_strided_slice %393 {offsets = [0, 96], sizes = [2, 32], strides = [1, 1]} : vector<2x128xf32> to vector<2x32xf32>
    %399 = arith.mulf %396, %360 : vector<2x32xf32>
    %400 = arith.mulf %395, %397 : vector<2x32xf32>
    %401 = arith.addf %399, %400 : vector<2x32xf32>
    %402 = math.tanh %401 : vector<2x32xf32>
    %403 = arith.mulf %398, %402 : vector<2x32xf32>
    %404 = vector.extract_strided_slice %403 {offsets = [0, 0], sizes = [1, 32], strides = [1, 1]} : vector<2x32xf32> to vector<1x32xf32>
    %c7_150 = arith.constant 7 : index
    %c0_151 = arith.constant 0 : index
    %405 = vector.load %arg14[%c7_150, %c0_151] : memref<16x32xf32, #tpu.memory_space<vmem>>, vector<1x32xf32>
    tpu.vector_store %arg14[%c7_150, %c0_151], %404 {strides = array<i32>} : memref<16x32xf32, #tpu.memory_space<vmem>>, vector<1x32xf32>,
    %406 = vector.extract_strided_slice %403 {offsets = [1, 0], sizes = [1, 32], strides = [1, 1]} : vector<2x32xf32> to vector<1x32xf32>
    %c15_152 = arith.constant 15 : index
    %c0_153 = arith.constant 0 : index
    %407 = vector.load %arg14[%c15_152, %c0_153] : memref<16x32xf32, #tpu.memory_space<vmem>>, vector<1x32xf32>
    tpu.vector_store %arg14[%c15_152, %c0_153], %406 {strides = array<i32>} : memref<16x32xf32, #tpu.memory_space<vmem>>, vector<1x32xf32>,
    %c0_154 = arith.constant 0 : index
    %c0_155 = arith.constant 0 : index
    %408 = vector.load %arg14[%c0_154, %c0_155] : memref<16x32xf32, #tpu.memory_space<vmem>>, vector<16x32xf32>
    %c0_156 = arith.constant 0 : index
    %c0_157 = arith.constant 0 : index
    %409 = vector.load %arg8[%c0_156, %c0_157] : memref<32x64xf32, #tpu.memory_space<vmem>>, vector<32x64xf32>
    %cst_158 = arith.constant dense<0.000000e+00> : vector<16x64xf32>
    %410 = tpu.matmul %408, %409, %cst_158 {dimension_numbers = #tpu.dot_dimension_numbers<[1], [0], [0], [1], [0, 0, 1, 1], [], []>} : vector<16x32xf32>, vector<32x64xf32>, vector<16x64xf32> -> vector<16x64xf32>
    %c0_159 = arith.constant 0 : index
    %c0_160 = arith.constant 0 : index
    %411 = vector.load %arg9[%c0_159, %c0_160] : memref<1x64xf32, #tpu.memory_space<vmem>>, vector<1x64xf32>
    %412 = vector.broadcast %411 : vector<1x64xf32> to vector<16x64xf32>
    %413 = arith.addf %410, %412 : vector<16x64xf32>
    %c0_161 = arith.constant 0 : index
    %c0_162 = arith.constant 0 : index
    %414 = vector.load %arg10[%c0_161, %c0_162] : memref<16x64xf32, #tpu.memory_space<vmem>>, vector<16x64xf32>
    tpu.vector_store %arg10[%c0_161, %c0_162], %413 {strides = array<i32>} : memref<16x64xf32, #tpu.memory_space<vmem>>, vector<16x64xf32>,
    %c0_163 = arith.constant 0 : index
    %c0_164 = arith.constant 0 : index
    %c0_165 = arith.constant 0 : index
    %415 = vector.load %arg11[%c0_163, %c0_164, %c0_165] : memref<2x2x32xf32, #tpu.memory_space<vmem>>, vector<1x2x32xf32>
    %416 = vector.shape_cast %415 : vector<1x2x32xf32> to vector<2x32xf32>
    %417 = vector.shape_cast %384 : vector<2x32xf32> to vector<1x2x32xf32>
    tpu.vector_store %arg11[%c0_163, %c0_164, %c0_165], %417 {strides = array<i32>} : memref<2x2x32xf32, #tpu.memory_space<vmem>>, vector<1x2x32xf32>,
    %c1_166 = arith.constant 1 : index
    %c0_167 = arith.constant 0 : index
    %c0_168 = arith.constant 0 : index
    %418 = vector.load %arg11[%c1_166, %c0_167, %c0_168] : memref<2x2x32xf32, #tpu.memory_space<vmem>>, vector<1x2x32xf32>
    %419 = vector.shape_cast %418 : vector<1x2x32xf32> to vector<2x32xf32>
    %420 = vector.shape_cast %403 : vector<2x32xf32> to vector<1x2x32xf32>
    tpu.vector_store %arg11[%c1_166, %c0_167, %c0_168], %420 {strides = array<i32>} : memref<2x2x32xf32, #tpu.memory_space<vmem>>, vector<1x2x32xf32>,
    %c0_169 = arith.constant 0 : index
    %c0_170 = arith.constant 0 : index
    %c0_171 = arith.constant 0 : index
    %421 = vector.load %arg12[%c0_169, %c0_170, %c0_171] : memref<2x2x32xf32, #tpu.memory_space<vmem>>, vector<1x2x32xf32>
    %422 = vector.shape_cast %421 : vector<1x2x32xf32> to vector<2x32xf32>
    %423 = vector.shape_cast %382 : vector<2x32xf32> to vector<1x2x32xf32>
    tpu.vector_store %arg12[%c0_169, %c0_170, %c0_171], %423 {strides = array<i32>} : memref<2x2x32xf32, #tpu.memory_space<vmem>>, vector<1x2x32xf32>,
    %c1_172 = arith.constant 1 : index
    %c0_173 = arith.constant 0 : index
    %c0_174 = arith.constant 0 : index
    %424 = vector.load %arg12[%c1_172, %c0_173, %c0_174] : memref<2x2x32xf32, #tpu.memory_space<vmem>>, vector<1x2x32xf32>
    %425 = vector.shape_cast %424 : vector<1x2x32xf32> to vector<2x32xf32>
    %426 = vector.shape_cast %401 : vector<2x32xf32> to vector<1x2x32xf32>
    tpu.vector_store %arg12[%c1_172, %c0_173, %c0_174], %426 {strides = array<i32>} : memref<2x2x32xf32, #tpu.memory_space<vmem>>, vector<1x2x32xf32>,
    return
  }
}

</mosaic_0001>

<bundles_post_ra>
// kernel: poetry_model_forward.1
= control target key start
LH: loop header
LB: loop body
LE: loop exit
PB: predicated region body
PF: predicated region fallthrough
CT: control target
= control target key end

     0   :  { %18 = vsyncpa [#allocation7], 0  ;;  %s4237_s0 = inlined_call_operand.vmem [shape: s32[2,8], index: 0, kind: input, shape index: {}]   ;;  %s4238_s1 = inlined_call_operand.vmem [shape: f32[64,32], index: 1, kind: input, shape index: {}]   ;;  %s4239_s2 = inlined_call_operand.vmem [shape: f32[32,128], index: 2, kind: input, shape index: {}]   ;;  %s4240_s3 = inlined_call_operand.vmem [shape: f32[32,128], index: 3, kind: input, shape index: {}]   ;;  %s4241_s4 = inlined_call_operand.vmem [shape: f32[1,128], index: 4, kind: input, shape index: {}]   ;;  %s4242_s5 = inlined_call_operand.vmem [shape: f32[32,128], index: 5, kind: input, shape index: {}]   ;;  %s4243_s6 = inlined_call_operand.vmem [shape: f32[32,128], index: 6, kind: input, shape index: {}]   ;;  %s4244_s7 = inlined_call_operand.vmem [shape: f32[1,128], index: 7, kind: input, shape index: {}]   ;;  %s4245_s8 = inlined_call_operand.hbm [shape: f32[32,64], index: 8, kind: input, shape index: {}]   ;;  %s4246_s9 = inlined_call_operand.hbm [shape: f32[1,64], index: 9, kind: input, shape index: {}]   ;;  %s4247_s10 = inlined_call_operand.hbm [shape: f32[16,64], index: 10, kind: output, shape index: {0}]   ;;  %s4248_s11 = inlined_call_operand.hbm [shape: f32[2,2,32], index: 11, kind: output, shape index: {1}]   ;;  %s4249_s12 = inlined_call_operand.hbm [shape: f32[2,2,32], index: 12, kind: output, shape index: {2}]  }
   0x1   :  { %19 = vsyncpa [#allocation5], 0 }
   0x2   :  { %20 = vsyncpa [#allocation10], 0 }
   0x3   :  { %21 = vsyncpa [#allocation6], 0 }
   0x4   :  { %22 = vsyncpa [#allocation13], 0  ;;  %s29_s23 = sshll.u32 %s4237_s0, 4  ;;  %s30_s23 = int_to_ptr.vmem [resolvable:$true] %s29_s23 }
   0x5   :  { %s3453_s24 = scalar_lea.vmem %s30_s23, 32  ;;  %p3458_p1 = scmp.lt.s32.totalorder %s30_s23, %s30_s23 }
   0x6   :  { %p3454_p0 = scmp.ne.s32.totalorder %s30_s23, %s3453_s24  ;;  %p3459_p2 = scmp.lt.s32.totalorder %s3453_s24, %s3453_s24 }
   0x8   :  { %p3460_p3 = por %p3459_p2, %p3458_p1 }
   0xa   :  { %p3461_p4 = pnand %p3460_p3, %p3454_p0 }
   0xc   :  { %3464 = shalt.err (!%p3461_p4)
}
   0xd   :  { %s3585_s25 = smov [#allocation4]   ;;  %s3586_s26 = smov [#allocation8]  }
   0xe   :  { %32 = dma.vmem_to_smem %s30_s23, 32, %s3585_s25, [#allocation7]  }
   0xf   :  { %s52_s27 = sshll.u32 %s3586_s26, 4  ;;  %s3465_s30 = scalar_lea.hbm %s4245_s8, 512  ;;  %s53_s27 = int_to_ptr.vmem [resolvable:$true] %s52_s27 }
  0x10   :  { %p3466_p5 = scmp.ne.s32.totalorder %s4245_s8, %s3465_s30  ;;  %p3469_p6 = scmp.lt.u32.totalorder %s3465_s30, %s4245_s8 }
  0x12   :  { %p3471_p7 = pnand %p3469_p6, %p3466_p5 }
  0x14   :  { %3474 = shalt.err (!%p3471_p7)
}
  0x15   :  { %s3475_s16 = scalar_lea.vmem %s53_s27, 512  ;;  %p3480_p9 = scmp.lt.s32.totalorder %s53_s27, %s53_s27 }
  0x16   :  { %p3476_p8 = scmp.ne.s32.totalorder %s53_s27, %s3475_s16  ;;  %p3481_p10 = scmp.lt.s32.totalorder %s3475_s16, %s3475_s16 }
  0x18   :  { %p3482_p11 = por %p3481_p10, %p3480_p9 }
  0x1a   :  { %p3483_p12 = pnand %p3482_p11, %p3476_p8 }
  0x1c   :  { %3486 = shalt.err (!%p3483_p12)
}
  0x1d   :  { %s3587_s17 = smov 128   ;;  %s3588_s18 = smov 8  }
  0x1e   :  { %58 = dma.hbm_to_vmem [thread:$0]  %s4245_s8, 512, %s53_s27, [#allocation5], %s3587_s17, %s3587_s17, %s3588_s18  }
  0x1f   :  { %s3589_s21 = smov [#allocation9]   ;;  %s3487_s25 = scalar_lea.hbm %s4246_s9, 16 }
  0x20   :  { %s65_s22 = sshll.u32 %s3589_s21, 4  ;;  %p3488_p13 = scmp.ne.s32.totalorder %s4246_s9, %s3487_s25  ;;  %s66_s22 = int_to_ptr.vmem [resolvable:$true] %s65_s22 }
  0x21   :  { %p3491_p0 = scmp.lt.u32.totalorder %s3487_s25, %s4246_s9 }
  0x23   :  { %p3493_p1 = pnand %p3491_p0, %p3488_p13 }
  0x25   :  { %3496 = shalt.err (!%p3493_p1)
}
  0x26   :  { %s3497_s13 = scalar_lea.vmem %s66_s22, 16  ;;  %s3501_s8 = scalar_lea.vmem %s66_s22, 32 }
  0x27   :  { %p3498_p2 = scmp.ne.s32.totalorder %s66_s22, %s3497_s13  ;;  %p3502_p3 = scmp.lt.s32.totalorder %s66_s22, %s66_s22 }
  0x28   :  { %p3503_p4 = scmp.lt.s32.totalorder %s3501_s8, %s3497_s13 }
  0x2a   :  { %p3504_p5 = por %p3503_p4, %p3502_p3 }
  0x2c   :  { %p3505_p6 = pnand %p3504_p5, %p3498_p2 }
  0x2e   :  { %3508 = shalt.err (!%p3505_p6)
}
  0x2f   :  { %68 = dma.hbm_to_vmem [thread:$0]  %s4246_s9, 16, %s66_s22, [#allocation10]  }
  0x30   :  { %3575 = dma.done.wait [#allocation7], 32  }
  0x31   :  { %3576 = vsyncadd [#allocation7], 4294967264 }
  0x32   :  { %3577 = dma.done.wait [#allocation5], 512  }
  0x33   :  { %3578 = vsyncadd [#allocation5], 4294966784 }
  0x34   :  { %3579 = dma.done.wait [#allocation10], 16  }
  0x35   :  { %3580 = vsyncadd [#allocation10], 4294967280 }
  0x36   :  { %78 = sfence }
  0x37   :  { %v165_v0 = vld [vmem:[%s4239_s2] sm:$0xff]  ;;  %v166_v1 = vld [vmem:[%s4239_s2 + $0x8] sm:$0xff]  ;;  %s3704_s9 = sld [smem:[#allocation4]]  ;;  %v3590_v4 = vmov 0.0|0.0   ;;  %v167_v6 = vld [vmem:[%s4239_s2 + $0x10] sm:$0xff]  ;;  %s3720_s30 = sld [smem:[#allocation4 + $0x1]] }
  0x38   :  { %v144_v2 = vld [vmem:[%s4240_s3] sm:$0xff]  ;;  %v3149_v3 = vpack.c.bf16 %v166_v1, %v165_v0  ;;  %3157 = vmatprep.subr.bf16.mxu1 %v3590_v4  ;;  %v145_v5 = vld [vmem:[%s4240_s3 + $0x8] sm:$0xff]  ;;  %v168_v7 = vld [vmem:[%s4239_s2 + $0x18] sm:$0xff]  ;;  %s3716_s29 = sld [smem:[#allocation4 + $0x80]]  ;;  %s3722_s13 = sld [smem:[#allocation4 + $0x81]]  ;;  %vm82_vm0 = vcmask 253952  }
  0x39   :  { %v3718_v8 = vpack.c.bf16 %v145_v5, %v144_v2  ;;  %v3153_v9 = vpack.c.bf16 %v168_v7, %v167_v6  ;;  %v146_v10 = vld [vmem:[%s4240_s3 + $0x10] sm:$0xff]  ;;  %s3727_s14 = sld [smem:[#allocation4 + $0x2]]  ;;  %v147_v11 = vld [vmem:[%s4240_s3 + $0x18] sm:$0xff]  ;;  %s3735_s16 = sld [smem:[#allocation4 + $0x3]]  ;;  %vm3591_vm1 = vmmov 0   ;;  %v3592_v13 = vmov 0.0  }
  0x3a   :  { %3150 = vmatprep.subr.bf16.mxu0 %v3149_v3  ;;  %s3729_s0 = sld [smem:[#allocation4 + $0x82]]  ;;  %s3737_s19 = sld [smem:[#allocation4 + $0x83]]  ;;  %v3739_v12 = vpack.c.bf16 %v147_v11, %v146_v10  ;;  %2882 = vmatprep.mubr.msk.f32.mxu1 %vm3591_vm1, %v3592_v13  ;;  %vm176_vm2 = vcmask 261120   ;;  %v2687_v34 = vld [vmem:[%s4241_s4] ss:$0 sm:$0xff]  ;;  %v153_v51 = vld [vmem:[%s4243_s6 + $0x8] sm:$0xff] }
  0x3b   :  { %3152 = vmatpush3.bf16.msra.mxu0 %v3149_v3  ;;  %3159 = vmatpush3.bf16.msra.mxu1 %v3718_v8  ;;  %s3742_s20 = sld [smem:[#allocation4 + $0x4]]  ;;  %s3750_s24 = sld [smem:[#allocation4 + $0x5]]  ;;  %v152_v50 = vld [vmem:[%s4243_s6] sm:$0xff]  ;;  %v154_v52 = vld [vmem:[%s4243_s6 + $0x10] sm:$0xff]  ;;  %v155_v54 = vld [vmem:[%s4243_s6 + $0x18] sm:$0xff]  ;;  %vm531_vm3 = vcmask 254977  }
  0x3c   :  { %3154 = vmatprep.subr.bf16.mxu0 %v3153_v9  ;;  %3160 = vmatprep.subr.bf16.mxu1 %v3590_v4  ;;  %s3744_s21 = sld [smem:[#allocation4 + $0x84]]  ;;  %s3758_s8 = sld [smem:[#allocation4 + $0x85]]  ;;  %v3860_v53 = vpack.c.bf16 %v153_v51, %v152_v50  ;;  %v148_v55 = vld [vmem:[%s4242_s5] sm:$0xff]  ;;  %v149_v56 = vld [vmem:[%s4242_s5 + $0x8] sm:$0xff]  ;;  %v150_v58 = vld [vmem:[%s4242_s5 + $0x10] sm:$0xff]  ;;  %v3880_v60 = vpack.c.bf16 %v155_v54, %v154_v52  ;;  %vm2589_vm4 = vcmask 261126  }
  0x3d   :  { %s80_s23 = scalar_lea.vmem %s4238_s1, %s3704_s9  ;;  %s89_s2 = scalar_lea.vmem %s4238_s1, %s3720_s30  ;;  %v3871_v57 = vpack.c.bf16 %v149_v56, %v148_v55  ;;  %v151_v59 = vld [vmem:[%s4242_s5 + $0x18] sm:$0xff]  ;;  %v3917_v5 = vld [vmem:[%s4244_s7] ss:$0 sm:$0xff]  ;;  %vm2592_vm5 = vcmask 254976  }
  0x3e   :  { %v81_v14 = vld [vmem:[%s80_s23] sm:$0x1]  ;;  %s85_s28 = scalar_lea.vmem %s4238_s1, %s3716_s29  ;;  %s93_s22 = scalar_lea.vmem %s4238_s1, %s3722_s13  ;;  %v3884_v61 = vpack.c.bf16 %v151_v59, %v150_v58 }
  0x3f   :  { %3156 = vmatpush3.bf16.msra.mxu0 %v3153_v9  ;;  %83 = vst.msk [vmem:[#allocation2] sm:$0x1] %vm82_vm0, %v81_v14  ;;  %v86_v15 = vld [vmem:[%s85_s28] sm:$0x1]  ;;  %3162 = vmatpush3.bf16.msra.mxu1 %v3739_v12  ;;  %s97_s25 = scalar_lea.vmem %s4238_s1, %s3727_s14  ;;  %s105_s27 = scalar_lea.vmem %s4238_s1, %s3735_s16 }
  0x40   :  { %87 = vst.msk [vmem:[#allocation2 + $0x1] sm:$0x1] %vm82_vm0, %v86_v15  ;;  %v90_v16 = vld [vmem:[%s89_s2] sm:$0x1]  ;;  %s101_s30 = scalar_lea.vmem %s4238_s1, %s3729_s0  ;;  %3163 = vmatprep.subr.bf16.mxu0 %v3590_v4  ;;  %3169 = vmatprep.subr.bf16.mxu1 %v3590_v4  ;;  %s109_s15 = scalar_lea.vmem %s4238_s1, %s3737_s19 }
  0x41   :  { %v94_v17 = vld [vmem:[%s93_s22] sm:$0x1]  ;;  %91 = vst.msk [vmem:[#allocation2 + $0x2] sm:$0x1] %vm82_vm0, %v90_v16  ;;  %s113_s22 = scalar_lea.vmem %s4238_s1, %s3742_s20  ;;  %s121_s26 = scalar_lea.vmem %s4238_s1, %s3750_s24 }
  0x42   :  { %95 = vst.msk [vmem:[#allocation2 + $0x3] sm:$0x1] %vm82_vm0, %v94_v17  ;;  %v98_v18 = vld [vmem:[%s97_s25] sm:$0x1]  ;;  %s117_s25 = scalar_lea.vmem %s4238_s1, %s3744_s21  ;;  %2883 = vmatmul.mubr.f32.vlgmr.msra.gmra.mrb[0].mxu1 %v3592_v13  ;;  %s2682_s28 = sld [smem:[#allocation4 + $0x6]] }
  0x43   :  { %v102_v19 = vld [vmem:[%s101_s30] sm:$0x1]  ;;  %99 = vst.msk [vmem:[#allocation2 + $0x4] sm:$0x1] %vm82_vm0, %v98_v18  ;;  %2904 = vmatprep.mubr.msk.f32.mxu1 %vm3591_vm1, %v3592_v13  ;;  %s125_s30 = scalar_lea.vmem %s4238_s1, %s3758_s8  ;;  %s2683_s13 = sld [smem:[#allocation4 + $0x86]]  ;;  %3171 = vmatpush3.bf16.msra.mxu1 %v3871_v57 }
  0x44   :  { %103 = vst.msk [vmem:[#allocation2 + $0x5] sm:$0x1] %vm82_vm0, %v102_v19  ;;  %v106_v20 = vld [vmem:[%s105_s27] sm:$0x1]  ;;  %s2684_s9 = sld [smem:[#allocation4 + $0x7]]  ;;  %s3594_s4 = smov 32   ;;  %3172 = vmatprep.subr.bf16.mxu1 %v3590_v4 }
  0x45   :  { %v110_v21 = vld [vmem:[%s109_s15] sm:$0x1]  ;;  %107 = vst.msk [vmem:[#allocation2 + $0x6] sm:$0x1] %vm82_vm0, %v106_v20  ;;  %s2685_s27 = sld [smem:[#allocation4 + $0x87]] }
  0x46   :  { %111 = vst.msk [vmem:[#allocation2 + $0x7] sm:$0x1] %vm82_vm0, %v110_v21  ;;  %v114_v22 = vld [vmem:[%s113_s22] sm:$0x1] }
  0x47   :  { %v118_v23 = vld [vmem:[%s117_s25] sm:$0x1]  ;;  %115 = vst.msk [vmem:[#allocation2 + $0x8] sm:$0x1] %vm82_vm0, %v114_v22  ;;  %3174 = vmatpush3.bf16.msra.mxu1 %v3884_v61 }
  0x48   :  { %119 = vst.msk [vmem:[#allocation2 + $0x9] sm:$0x1] %vm82_vm0, %v118_v23  ;;  %v122_v24 = vld [vmem:[%s121_s26] sm:$0x1]  ;;  %s129_s2 = scalar_lea.vmem %s4238_s1, %s2682_s28  ;;  %3181 = vmatprep.subr.bf16.mxu1 %v3590_v4 }
  0x49   :  { %123 = vst.msk [vmem:[#allocation2 + $0xa] sm:$0x1] %vm82_vm0, %v122_v24  ;;  %v126_v25 = vld [vmem:[%s125_s30] sm:$0x1]  ;;  %s133_s3 = scalar_lea.vmem %s4238_s1, %s2683_s13 }
  0x4a   :  { %127 = vst.msk [vmem:[#allocation2 + $0xb] sm:$0x1] %vm82_vm0, %v126_v25  ;;  %v130_v27 = vld [vmem:[%s129_s2] sm:$0x1]  ;;  %s137_s29 = scalar_lea.vmem %s4238_s1, %s2684_s9 }
  0x4b   :  { %131 = vst.msk [vmem:[#allocation2 + $0xc] sm:$0x1] %vm82_vm0, %v130_v27  ;;  %v134_v28 = vld [vmem:[%s133_s3] sm:$0x1]  ;;  %s141_s16 = scalar_lea.vmem %s4238_s1, %s2685_s27  ;;  %s3593_s1 = smov 64  }
  0x4c   :  { %135 = vst.msk [vmem:[#allocation2 + $0xd] sm:$0x1] %vm82_vm0, %v134_v28  ;;  %v138_v29 = vld [vmem:[%s137_s29] sm:$0x1] }
  0x4d   :  { %v163_v26 = vld [vmem:[#allocation2] sm:$0xff]  ;;  %139 = vst.msk [vmem:[#allocation2 + $0xe] sm:$0x1] %vm82_vm0, %v138_v29 }
  0x4e   :  { %2871 = vmatprep.mubr.msk.f32.mxu0 %vm176_vm2, %v163_v26  ;;  %v142_v30 = vld [vmem:[%s141_s16] sm:$0x1]  ;;  %s3596_s16 = smov [#allocation12]  }
  0x4f   :  { %143 = vst.msk [vmem:[#allocation2 + $0xf] sm:$0x1] %vm82_vm0, %v142_v30  ;;  %s2622_s19 = sshll.u32 %s3596_s16, 4  ;;  %s2623_s19 = int_to_ptr.vmem [resolvable:$true] %s2622_s19 }
  0x50   :  { %s3509_s26 = scalar_lea.vmem %s2623_s19, 64  ;;  %p3514_p8 = scmp.lt.s32.totalorder %s2623_s19, %s2623_s19 }
  0x51   :  { %p3510_p7 = scmp.ne.s32.totalorder %s2623_s19, %s3509_s26  ;;  %p3515_p9 = scmp.lt.s32.totalorder %s3509_s26, %s3509_s26 }
  0x53   :  { %p3516_p10 = por %p3515_p9, %p3514_p8 }
  0x55   :  { %p3517_p11 = pnand %p3516_p10, %p3510_p7 }
  0x56   :  { %v164_v31 = vld [vmem:[#allocation2 + $0x8] sm:$0xff] }
  0x57   :  { %2872 = vmatmul.mubr.msk.f32.vlgmr.msra.gmra.mrb[0].mxu0 %vm176_vm2, %v164_v31 }
  0x58   :  { %2893 = vmatprep.mubr.msk.f32.mxu0 %vm3591_vm1, %v3592_v13  ;;  %3165 = vmatpush3.bf16.msra.mxu0 %v3860_v53 }
  0x59   :  { %3166 = vmatprep.subr.bf16.mxu0 %v3590_v4 }
  0x5c   :  { %3168 = vmatpush3.bf16.msra.mxu0 %v3880_v60 }
  0x5d   :  { %3175 = vmatprep.subr.bf16.mxu0 %v3590_v4 }
  0x5f   :  { %2894 = vmatmul.mubr.f32.vlgmr.msra.gmra.mrb[2].mxu0 %v3592_v13 }
  0x60   :  { %3177 = vmatpush3.bf16.msra.mxu0 %v3718_v8  ;;  %2915 = vmatprep.mubr.msk.f32.mxu0 %vm3591_vm1, %v3592_v13 }
  0x61   :  { %3178 = vmatprep.subr.bf16.mxu0 %v3590_v4 }
  0x64   :  { %3180 = vmatpush3.bf16.msra.mxu0 %v3739_v12 }
  0x65   :  { %3187 = vmatprep.subr.bf16.mxu0 %v3590_v4 }
 0x115   :  { %v327_v32 = vpop.f32.mrb[0].mxu1 }
 0x116   :  { %v2884_v33 = vpop.f32.mrb[1].mxu1 }
 0x12a   :  { %v2873_v35 = vpop.f32.mrb[0].mxu0 }
 0x12b   :  { %v3841_v36 = vadd.f32 %v2873_v35, %v2687_v34  ;;  %v249_v37 = vpop.f32.mrb[1].mxu0 }
 0x12c   :  { %v3843_v38 = vadd.f32 %v2687_v34, %v249_v37 }
 0x12e   :  { %v331_v39 = vadd.f32 %v327_v32, %v3843_v38 }
 0x130   :  { %3324 = vtanh.f32 %v331_v39  ;;  %v2690_v41 = vmul.f32 -1.442695, %v331_v39 }
 0x132   :  { %3326 = vpow2.f32 %v2690_v41  ;;  %v422_v1 = vpop.f32.mrb[2].mxu0 }
 0x133   :  { %v2895_v2 = vpop.f32.mrb[3].mxu0 }
 0x13a   :  { %v3325_v40 = vpop.eup %3324 }
 0x13b   :  { %341 = vrot.lane.b32.xlu0 %v3325_v40, %s3593_s1 }
 0x13c   :  { %v3327_v42 = vpop.eup %3326 }
 0x13d   :  { %v335_v43 = vadd.f32 1.0, %v3327_v42 }
 0x13f   :  { %3328 = vrcp.f32 %v335_v43 }
 0x149   :  { %v3329_v44 = vpop.eup %3328 }
 0x14a   :  { %v339_v47 = vmul.f32 0.0, %v3329_v44 }
 0x1ad   :  { %v342_v45 = vpop.permute.xlu0 %341 }
 0x1ae   :  { %v344_v46 = vmul.f32 %v3329_v44, %v342_v45 }
 0x1b0   :  { %346 = vrot.lane.b32.xlu0 %v344_v46, %s3594_s4 }
 0x222   :  { %v347_v48 = vpop.permute.xlu0 %346 }
 0x223   :  { %v3848_v49 = vadd.f32 %v347_v48, %v339_v47 }
 0x225   :  { %3330 = vtanh.f32 %v3848_v49  ;;  %v615_v31 = vrot.slane %v3848_v49, 6 }
 0x22f   :  { %v3331_v62 = vpop.eup %3330 }
 0x230   :  { %352 = vrot.lane.b32.xlu1 %v3331_v62, %s3593_s1 }
 0x2a2   :  { %v353_v63 = vpop.permute.xlu1 %352 }
 0x2a3   :  { %v355_v0 = vmul.f32 %v3329_v44, %v353_v63 }
 0x2a5   :  { %427 = vrot.lane.b32.xlu1 %v355_v0, %s3594_s4 }
 0x317   :  { %v428_v3 = vpop.permute.xlu1 %427 }
 0x318   :  { %2905 = vmatmul.mubr.msk.f32.vlgmr.msra.gmra.mrb[2].mxu1 %vm176_vm2, %v428_v3  ;;  %2916 = vmatmul.mubr.msk.f32.vlgmr.msra.gmra.mrb[4].mxu0 %vm176_vm2, %v428_v3 }
 0x319   :  { %3183 = vmatpush3.bf16.msra.mxu1 %v3860_v53  ;;  %3189 = vmatpush3.bf16.msra.mxu0 %v3871_v57 }
 0x31a   :  { %3184 = vmatprep.subr.bf16.mxu1 %v3590_v4  ;;  %3190 = vmatprep.subr.bf16.mxu0 %v3590_v4 }
 0x31b   :  { %2926 = vmatprep.mubr.msk.f32.mxu1 %vm3591_vm1, %v3592_v13  ;;  %2937 = vmatprep.mubr.msk.f32.mxu0 %vm3591_vm1, %v3592_v13 }
 0x31d   :  { %3186 = vmatpush3.bf16.msra.mxu1 %v3880_v60  ;;  %3192 = vmatpush3.bf16.msra.mxu0 %v3884_v61 }
 0x31e   :  { %3193 = vmatprep.subr.bf16.mxu1 %v3590_v4  ;;  %3199 = vmatprep.subr.bf16.mxu0 %v3590_v4 }
 0x3eb   :  { %v497_v6 = vpop.f32.mrb[2].mxu1  ;;  %v599_v7 = vpop.f32.mrb[4].mxu0 }
 0x3ec   :  { %v498_v9 = vadd.f32 %v497_v6, %v422_v1  ;;  %v604_v10 = vrot.slane %v599_v7, 6  ;;  %v2906_v11 = vpop.f32.mrb[3].mxu1  ;;  %v2917_v14 = vpop.f32.mrb[5].mxu0 }
 0x3ee   :  { %v501_v15 = vadd.f32 %v3917_v5, %v498_v9  ;;  %v606_v16 = vadd.f32 %v604_v10, %v3843_v38 }
 0x3f0   :  { %3332 = vtanh.f32 %v501_v15  ;;  %v2692_v19 = vmul.f32 -1.442695, %v501_v15  ;;  %v2694_v20 = vmul.f32 -1.442695, %v606_v16 }
 0x3f1   :  { %3334 = vtanh.f32 %v606_v16 }
 0x3f2   :  { %3336 = vpow2.f32 %v2692_v19 }
 0x3f3   :  { %3338 = vpow2.f32 %v2694_v20 }
 0x3fa   :  { %v3333_v17 = vpop.eup %3332 }
 0x3fb   :  { %v3335_v18 = vpop.eup %3334  ;;  %511 = vrot.lane.b32.xlu0 %v3333_v17, %s3593_s1 }
 0x3fc   :  { %619 = vrot.lane.b32.xlu1 %v3335_v18, %s3593_s1  ;;  %v3337_v21 = vpop.eup %3336 }
 0x3fd   :  { %v3339_v22 = vpop.eup %3338  ;;  %v505_v23 = vadd.f32 1.0, %v3337_v21 }
 0x3fe   :  { %v610_v24 = vadd.f32 1.0, %v3339_v22 }
 0x3ff   :  { %3340 = vrcp.f32 %v505_v23 }
 0x400   :  { %3342 = vrcp.f32 %v610_v24 }
 0x409   :  { %v3341_v25 = vpop.eup %3340 }
 0x40a   :  { %v3343_v27 = vpop.eup %3342  ;;  %v509_v32 = vmul.f32 0.0, %v3341_v25 }
 0x40b   :  { %v617_v33 = vmul.f32 %v3343_v27, %v615_v31 }
 0x46d   :  { %v512_v26 = vpop.permute.xlu0 %511 }
 0x46e   :  { %v620_v28 = vpop.permute.xlu1 %619  ;;  %v514_v29 = vmul.f32 %v3341_v25, %v512_v26 }
 0x46f   :  { %v622_v30 = vmul.f32 %v3343_v27, %v620_v28 }
 0x470   :  { %516 = vrot.lane.b32.xlu0 %v514_v29, %s3594_s4 }
 0x471   :  { %624 = vrot.lane.b32.xlu1 %v622_v30, %s3594_s4 }
 0x4e2   :  { %v517_v34 = vpop.permute.xlu0 %516 }
 0x4e3   :  { %v625_v35 = vpop.permute.xlu1 %624  ;;  %v3926_v37 = vadd.f32 %v517_v34, %v509_v32 }
 0x4e4   :  { %v3928_v39 = vadd.f32 %v625_v35, %v617_v33 }
 0x4e5   :  { %3344 = vtanh.f32 %v3926_v37 }
 0x4e6   :  { %3346 = vtanh.f32 %v3928_v39  ;;  %v895_v21 = vrot.slane %v3928_v39, 6 }
 0x4ef   :  { %v3345_v40 = vpop.eup %3344 }
 0x4f0   :  { %v3347_v41 = vpop.eup %3346  ;;  %522 = vrot.lane.b32.xlu0 %v3345_v40, %s3593_s1 }
 0x4f1   :  { %630 = vrot.lane.b32.xlu1 %v3347_v41, %s3593_s1 }
 0x562   :  { %v523_v42 = vpop.permute.xlu0 %522 }
 0x563   :  { %v631_v43 = vpop.permute.xlu1 %630  ;;  %v525_v44 = vmul.f32 %v3341_v25, %v523_v42 }
 0x564   :  { %v633_v45 = vmul.f32 %v3343_v27, %v631_v43 }
 0x565   :  { %527 = vrot.lane.b32.xlu0 %v525_v44, %s3594_s4 }
 0x566   :  { %v707_v46 = vrot.slane %v633_v45, 2 }
 0x568   :  { %708 = vrot.lane.b32.xlu1 %v707_v46, %s3594_s4 }
 0x5d7   :  { %v528_v47 = vpop.permute.xlu0 %527 }
 0x5d8   :  { %530 = vst.msk [vmem:[#allocation3] sm:$0x1] %vm82_vm0, %v528_v47  ;;  %2927 = vmatmul.mubr.msk.f32.vlgmr.msra.gmra.mrb[4].mxu1 %vm176_vm2, %v528_v47 }
 0x5d9   :  { %532 = vst.msk [vmem:[#allocation3 + $0x7] sm:$0x2] %vm531_vm3, %v528_v47  ;;  %3195 = vmatpush3.bf16.msra.mxu1 %v3718_v8  ;;  %2948 = vmatprep.mubr.msk.f32.mxu1 %vm3591_vm1, %v3592_v13 }
 0x5da   :  { %v709_v48 = vpop.permute.xlu1 %708  ;;  %3196 = vmatprep.subr.bf16.mxu1 %v3590_v4 }
 0x5db   :  { %2938 = vmatmul.mubr.msk.f32.vlgmr.msra.gmra.mrb[6].mxu0 %vm176_vm2, %v709_v48 }
 0x5dc   :  { %3201 = vmatpush3.bf16.msra.mxu0 %v3860_v53  ;;  %2959 = vmatprep.mubr.msk.f32.mxu0 %vm3591_vm1, %v3592_v13 }
 0x5dd   :  { %3198 = vmatpush3.bf16.msra.mxu1 %v3739_v12  ;;  %3202 = vmatprep.subr.bf16.mxu0 %v3590_v4 }
 0x5de   :  { %3205 = vmatprep.subr.bf16.mxu1 %v3590_v4 }
 0x5e0   :  { %2949 = vmatmul.mubr.msk.f32.vlgmr.msra.gmra.mrb[6].mxu1 %vm176_vm2, %v709_v48  ;;  %3204 = vmatpush3.bf16.msra.mxu0 %v3880_v60 }
 0x5e1   :  { %3211 = vmatprep.subr.bf16.mxu0 %v3590_v4  ;;  %3207 = vmatpush3.bf16.msra.mxu1 %v3871_v57 }
 0x5e2   :  { %3208 = vmatprep.subr.bf16.mxu1 %v3590_v4  ;;  %2970 = vmatprep.mubr.msk.f32.mxu1 %vm3591_vm1, %v3592_v13 }
 0x5e5   :  { %3210 = vmatpush3.bf16.msra.mxu1 %v3884_v61 }
 0x5e6   :  { %3217 = vmatprep.subr.bf16.mxu1 %v3590_v4 }
 0x6ab   :  { %v702_v49 = vpop.f32.mrb[4].mxu1 }
 0x6ac   :  { %v2928_v50 = vpop.f32.mrb[5].mxu1 }
 0x6ae   :  { %v778_v51 = vpop.f32.mrb[6].mxu0 }
 0x6af   :  { %v779_v52 = vadd.f32 %v778_v51, %v702_v49  ;;  %v2939_v54 = vpop.f32.mrb[7].mxu0 }
 0x6b1   :  { %v782_v55 = vadd.f32 %v3917_v5, %v779_v52 }
 0x6b3   :  { %3348 = vtanh.f32 %v782_v55  ;;  %v879_v56 = vpop.f32.mrb[6].mxu1  ;;  %v2697_v1 = vmul.f32 -1.442695, %v782_v55 }
 0x6b4   :  { %v884_v58 = vrot.slane %v879_v56, 4  ;;  %v2950_v59 = vpop.f32.mrb[7].mxu1 }
 0x6b6   :  { %v886_v62 = vadd.f32 %v884_v58, %v3843_v38 }
 0x6b8   :  { %3350 = vtanh.f32 %v886_v62  ;;  %v2699_v2 = vmul.f32 -1.442695, %v886_v62 }
 0x6b9   :  { %3352 = vpow2.f32 %v2697_v1 }
 0x6ba   :  { %3354 = vpow2.f32 %v2699_v2 }
 0x6bd   :  { %v3349_v63 = vpop.eup %3348 }
 0x6be   :  { %792 = vrot.lane.b32.xlu0 %v3349_v63, %s3593_s1 }
 0x6c2   :  { %v3351_v0 = vpop.eup %3350 }
 0x6c3   :  { %899 = vrot.lane.b32.xlu1 %v3351_v0, %s3593_s1  ;;  %v3353_v3 = vpop.eup %3352 }
 0x6c4   :  { %v786_v6 = vadd.f32 1.0, %v3353_v3  ;;  %v3355_v7 = vpop.eup %3354 }
 0x6c5   :  { %v890_v9 = vadd.f32 1.0, %v3355_v7 }
 0x6c6   :  { %3356 = vrcp.f32 %v786_v6 }
 0x6c7   :  { %3358 = vrcp.f32 %v890_v9 }
 0x6d0   :  { %v3357_v10 = vpop.eup %3356 }
 0x6d1   :  { %v3359_v15 = vpop.eup %3358  ;;  %v790_v18 = vmul.f32 %v3357_v10, %v3926_v37 }
 0x6d2   :  { %v897_v22 = vmul.f32 %v3359_v15, %v895_v21 }
 0x730   :  { %v793_v11 = vpop.permute.xlu0 %792 }
 0x731   :  { %v795_v14 = vmul.f32 %v3357_v10, %v793_v11 }
 0x733   :  { %797 = vrot.lane.b32.xlu0 %v795_v14, %s3594_s4 }
 0x735   :  { %v900_v16 = vpop.permute.xlu1 %899 }
 0x736   :  { %v902_v17 = vmul.f32 %v3359_v15, %v900_v16 }
 0x738   :  { %904 = vrot.lane.b32.xlu1 %v902_v17, %s3594_s4 }
 0x7a5   :  { %v798_v19 = vpop.permute.xlu0 %797 }
 0x7a6   :  { %v3966_v20 = vadd.f32 %v798_v19, %v790_v18 }
 0x7a8   :  { %3360 = vtanh.f32 %v3966_v20 }
 0x7aa   :  { %v905_v23 = vpop.permute.xlu1 %904 }
 0x7ab   :  { %v3970_v24 = vadd.f32 %v905_v23, %v897_v22 }
 0x7ad   :  { %3362 = vtanh.f32 %v3970_v24  ;;  %v1175_v63 = vrot.slane %v3970_v24, 6 }
 0x7b2   :  { %v3361_v25 = vpop.eup %3360 }
 0x7b3   :  { %803 = vrot.lane.b32.xlu0 %v3361_v25, %s3593_s1 }
 0x7b7   :  { %v3363_v26 = vpop.eup %3362 }
 0x7b8   :  { %910 = vrot.lane.b32.xlu1 %v3363_v26, %s3593_s1 }
 0x825   :  { %v804_v27 = vpop.permute.xlu0 %803 }
 0x826   :  { %v806_v28 = vmul.f32 %v3357_v10, %v804_v27 }
 0x828   :  { %808 = vrot.lane.b32.xlu0 %v806_v28, %s3594_s4 }
 0x82a   :  { %v911_v29 = vpop.permute.xlu1 %910 }
 0x82b   :  { %v913_v30 = vmul.f32 %v3359_v15, %v911_v29 }
 0x82d   :  { %v987_v31 = vrot.slane %v913_v30, 4 }
 0x82f   :  { %988 = vrot.lane.b32.xlu1 %v987_v31, %s3594_s4 }
 0x89a   :  { %v809_v32 = vpop.permute.xlu0 %808 }
 0x89b   :  { %811 = vst.msk [vmem:[#allocation3 + $0x1] sm:$0x1] %vm82_vm0, %v809_v32  ;;  %2960 = vmatmul.mubr.msk.f32.vlgmr.msra.gmra.mrb[8].mxu0 %vm176_vm2, %v809_v32 }
 0x89c   :  { %812 = vst.msk [vmem:[#allocation3 + $0x8] sm:$0x2] %vm531_vm3, %v809_v32  ;;  %3213 = vmatpush3.bf16.msra.mxu0 %v3718_v8  ;;  %2981 = vmatprep.mubr.msk.f32.mxu0 %vm3591_vm1, %v3592_v13 }
 0x89d   :  { %3214 = vmatprep.subr.bf16.mxu0 %v3590_v4 }
 0x8a0   :  { %3216 = vmatpush3.bf16.msra.mxu0 %v3739_v12 }
 0x8a1   :  { %v989_v33 = vpop.permute.xlu1 %988  ;;  %3223 = vmatprep.subr.bf16.mxu0 %v3590_v4 }
 0x8a2   :  { %2971 = vmatmul.mubr.msk.f32.vlgmr.msra.gmra.mrb[8].mxu1 %vm176_vm2, %v989_v33 }
 0x8a3   :  { %2982 = vmatmul.mubr.msk.f32.vlgmr.msra.gmra.mrb[10].mxu0 %vm176_vm2, %v989_v33  ;;  %3219 = vmatpush3.bf16.msra.mxu1 %v3860_v53 }
 0x8a4   :  { %3220 = vmatprep.subr.bf16.mxu1 %v3590_v4  ;;  %3225 = vmatpush3.bf16.msra.mxu0 %v3871_v57 }
 0x8a5   :  { %3226 = vmatprep.subr.bf16.mxu0 %v3590_v4  ;;  %2992 = vmatprep.mubr.msk.f32.mxu1 %vm3591_vm1, %v3592_v13 }
 0x8a6   :  { %3003 = vmatprep.mubr.msk.f32.mxu0 %vm3591_vm1, %v3592_v13 }
 0x8a7   :  { %3222 = vmatpush3.bf16.msra.mxu1 %v3880_v60 }
 0x8a8   :  { %3228 = vmatpush3.bf16.msra.mxu0 %v3884_v61  ;;  %3229 = vmatprep.subr.bf16.mxu1 %v3590_v4 }
 0x8a9   :  { %3235 = vmatprep.subr.bf16.mxu0 %v3590_v4 }
 0x96e   :  { %v982_v34 = vpop.f32.mrb[8].mxu0 }
 0x96f   :  { %v2961_v35 = vpop.f32.mrb[9].mxu0 }
 0x975   :  { %v1058_v37 = vpop.f32.mrb[8].mxu1 }
 0x976   :  { %v1059_v39 = vadd.f32 %v1058_v37, %v982_v34  ;;  %v1159_v40 = vpop.f32.mrb[10].mxu0  ;;  %v2972_v41 = vpop.f32.mrb[9].mxu1 }
 0x977   :  { %v1164_v42 = vrot.slane %v1159_v40, 2  ;;  %v2983_v43 = vpop.f32.mrb[11].mxu0 }
 0x978   :  { %v1062_v44 = vadd.f32 %v3917_v5, %v1059_v39 }
 0x979   :  { %v1166_v45 = vadd.f32 %v1164_v42, %v3843_v38 }
 0x97a   :  { %3364 = vtanh.f32 %v1062_v44  ;;  %v2702_v48 = vmul.f32 -1.442695, %v1062_v44 }
 0x97b   :  { %3366 = vtanh.f32 %v1166_v45  ;;  %v2704_v49 = vmul.f32 -1.442695, %v1166_v45 }
 0x97c   :  { %3368 = vpow2.f32 %v2702_v48 }
 0x97d   :  { %3370 = vpow2.f32 %v2704_v49 }
 0x984   :  { %v3365_v46 = vpop.eup %3364 }
 0x985   :  { %v3367_v47 = vpop.eup %3366  ;;  %1072 = vrot.lane.b32.xlu1 %v3365_v46, %s3593_s1 }
 0x986   :  { %1179 = vrot.lane.b32.xlu0 %v3367_v47, %s3593_s1  ;;  %v3369_v50 = vpop.eup %3368 }
 0x987   :  { %v3371_v51 = vpop.eup %3370  ;;  %v1066_v52 = vadd.f32 1.0, %v3369_v50 }
 0x988   :  { %v1170_v54 = vadd.f32 1.0, %v3371_v51 }
 0x989   :  { %3372 = vrcp.f32 %v1066_v52 }
 0x98a   :  { %3374 = vrcp.f32 %v1170_v54 }
 0x993   :  { %v3373_v55 = vpop.eup %3372 }
 0x994   :  { %v3375_v56 = vpop.eup %3374  ;;  %v1070_v0 = vmul.f32 %v3373_v55, %v3966_v20 }
 0x995   :  { %v1177_v1 = vmul.f32 %v3375_v56, %v1175_v63 }
 0x9f7   :  { %v1073_v38 = vpop.permute.xlu1 %1072 }
 0x9f8   :  { %v1180_v58 = vpop.permute.xlu0 %1179  ;;  %v1075_v59 = vmul.f32 %v3373_v55, %v1073_v38 }
 0x9f9   :  { %v1182_v62 = vmul.f32 %v3375_v56, %v1180_v58 }
 0x9fa   :  { %1077 = vrot.lane.b32.xlu1 %v1075_v59, %s3594_s4 }
 0x9fb   :  { %1184 = vrot.lane.b32.xlu0 %v1182_v62, %s3594_s4 }
 0xa6c   :  { %v1078_v2 = vpop.permute.xlu1 %1077 }
 0xa6d   :  { %v1185_v3 = vpop.permute.xlu0 %1184  ;;  %v4008_v6 = vadd.f32 %v1078_v2, %v1070_v0 }
 0xa6e   :  { %v4010_v7 = vadd.f32 %v1185_v3, %v1177_v1 }
 0xa6f   :  { %3376 = vtanh.f32 %v4008_v6 }
 0xa70   :  { %3378 = vtanh.f32 %v4010_v7  ;;  %v1452_v46 = vrot.slane %v4010_v7, 6 }
 0xa79   :  { %v3377_v9 = vpop.eup %3376 }
 0xa7a   :  { %v3379_v10 = vpop.eup %3378  ;;  %1083 = vrot.lane.b32.xlu1 %v3377_v9, %s3593_s1 }
 0xa7b   :  { %1190 = vrot.lane.b32.xlu0 %v3379_v10, %s3593_s1 }
 0xaec   :  { %v1084_v11 = vpop.permute.xlu1 %1083 }
 0xaed   :  { %v1191_v14 = vpop.permute.xlu0 %1190  ;;  %v1086_v15 = vmul.f32 %v3373_v55, %v1084_v11 }
 0xaee   :  { %v1193_v16 = vmul.f32 %v3375_v56, %v1191_v14 }
 0xaef   :  { %1088 = vrot.lane.b32.xlu0 %v1086_v15, %s3594_s4 }
 0xaf0   :  { %v1267_v17 = vrot.slane %v1193_v16, 6 }
 0xaf2   :  { %1268 = vrot.lane.b32.xlu1 %v1267_v17, %s3594_s4 }
 0xb61   :  { %v1089_v18 = vpop.permute.xlu0 %1088 }
 0xb62   :  { %1091 = vst.msk [vmem:[#allocation3 + $0x2] sm:$0x1] %vm82_vm0, %v1089_v18  ;;  %2993 = vmatmul.mubr.msk.f32.vlgmr.msra.gmra.mrb[10].mxu1 %vm176_vm2, %v1089_v18 }
 0xb63   :  { %1092 = vst.msk [vmem:[#allocation3 + $0x9] sm:$0x2] %vm531_vm3, %v1089_v18  ;;  %3231 = vmatpush3.bf16.msra.mxu1 %v3718_v8  ;;  %3014 = vmatprep.mubr.msk.f32.mxu1 %vm3591_vm1, %v3592_v13 }
 0xb64   :  { %v1269_v19 = vpop.permute.xlu1 %1268  ;;  %3232 = vmatprep.subr.bf16.mxu1 %v3590_v4 }
 0xb65   :  { %3004 = vmatmul.mubr.msk.f32.vlgmr.msra.gmra.mrb[12].mxu0 %vm176_vm2, %v1269_v19 }
 0xb66   :  { %3237 = vmatpush3.bf16.msra.mxu0 %v3860_v53  ;;  %3025 = vmatprep.mubr.msk.f32.mxu0 %vm3591_vm1, %v3592_v13 }
 0xb67   :  { %3234 = vmatpush3.bf16.msra.mxu1 %v3739_v12  ;;  %3238 = vmatprep.subr.bf16.mxu0 %v3590_v4 }
 0xb68   :  { %3241 = vmatprep.subr.bf16.mxu1 %v3590_v4 }
 0xb6a   :  { %3015 = vmatmul.mubr.msk.f32.vlgmr.msra.gmra.mrb[12].mxu1 %vm176_vm2, %v1269_v19  ;;  %3240 = vmatpush3.bf16.msra.mxu0 %v3880_v60 }
 0xb6b   :  { %3243 = vmatpush3.bf16.msra.mxu1 %v3871_v57  ;;  %3247 = vmatprep.subr.bf16.mxu0 %v3590_v4 }
 0xb6c   :  { %3244 = vmatprep.subr.bf16.mxu1 %v3590_v4  ;;  %3036 = vmatprep.mubr.msk.f32.mxu1 %vm3591_vm1, %v3592_v13 }
 0xb6f   :  { %3246 = vmatpush3.bf16.msra.mxu1 %v3884_v61 }
 0xb70   :  { %3253 = vmatprep.subr.bf16.mxu1 %v3590_v4 }
 0xc35   :  { %v1262_v20 = vpop.f32.mrb[10].mxu1 }
 0xc36   :  { %v2994_v21 = vpop.f32.mrb[11].mxu1 }
 0xc38   :  { %v1338_v22 = vpop.f32.mrb[12].mxu0 }
 0xc39   :  { %v1339_v23 = vadd.f32 %v1338_v22, %v1262_v20  ;;  %v3005_v24 = vpop.f32.mrb[13].mxu0 }
 0xc3b   :  { %v1342_v25 = vadd.f32 %v3917_v5, %v1339_v23 }
 0xc3d   :  { %3380 = vtanh.f32 %v1342_v25  ;;  %v1439_v26 = vpop.f32.mrb[12].mxu1  ;;  %v2707_v31 = vmul.f32 -1.442695, %v1342_v25 }
 0xc3e   :  { %v1443_v27 = vadd.f32 %v1439_v26, %v3841_v36  ;;  %v3016_v28 = vpop.f32.mrb[13].mxu1 }
 0xc40   :  { %3382 = vtanh.f32 %v1443_v27  ;;  %v2709_v32 = vmul.f32 -1.442695, %v1443_v27 }
 0xc41   :  { %3384 = vpow2.f32 %v2707_v31 }
 0xc42   :  { %3386 = vpow2.f32 %v2709_v32 }
 0xc47   :  { %v3381_v29 = vpop.eup %3380 }
 0xc48   :  { %1352 = vrot.lane.b32.xlu0 %v3381_v29, %s3593_s1 }
 0xc4a   :  { %v3383_v30 = vpop.eup %3382 }
 0xc4b   :  { %1456 = vrot.lane.b32.xlu1 %v3383_v30, %s3593_s1  ;;  %v3385_v33 = vpop.eup %3384 }
 0xc4c   :  { %v3387_v34 = vpop.eup %3386  ;;  %v1346_v35 = vadd.f32 1.0, %v3385_v33 }
 0xc4d   :  { %v1447_v37 = vadd.f32 1.0, %v3387_v34 }
 0xc4e   :  { %3388 = vrcp.f32 %v1346_v35 }
 0xc4f   :  { %3390 = vrcp.f32 %v1447_v37 }
 0xc58   :  { %v3389_v39 = vpop.eup %3388 }
 0xc59   :  { %v3391_v42 = vpop.eup %3390  ;;  %v1350_v45 = vmul.f32 %v3389_v39, %v4008_v6 }
 0xc5a   :  { %v1454_v49 = vmul.f32 %v3391_v42, %v1452_v46 }
 0xcba   :  { %v1353_v40 = vpop.permute.xlu0 %1352 }
 0xcbb   :  { %v1355_v41 = vmul.f32 %v3389_v39, %v1353_v40 }
 0xcbd   :  { %1357 = vrot.lane.b32.xlu0 %v1355_v41, %s3594_s4  ;;  %v1457_v43 = vpop.permute.xlu1 %1456 }
 0xcbe   :  { %v1459_v44 = vmul.f32 %v3391_v42, %v1457_v43 }
 0xcc0   :  { %1461 = vrot.lane.b32.xlu1 %v1459_v44, %s3594_s4 }
 0xd2f   :  { %v1358_v47 = vpop.permute.xlu0 %1357 }
 0xd30   :  { %v4049_v48 = vadd.f32 %v1358_v47, %v1350_v45 }
 0xd32   :  { %3392 = vtanh.f32 %v4049_v48  ;;  %v1462_v50 = vpop.permute.xlu1 %1461 }
 0xd33   :  { %v4052_v51 = vadd.f32 %v1462_v50, %v1454_v49 }
 0xd35   :  { %3394 = vtanh.f32 %v4052_v51  ;;  %v1731_v31 = vrot.slane %v4052_v51, 6 }
 0xd3c   :  { %v3393_v52 = vpop.eup %3392 }
 0xd3d   :  { %1363 = vrot.lane.b32.xlu0 %v3393_v52, %s3593_s1 }
 0xd3f   :  { %v3395_v54 = vpop.eup %3394 }
 0xd40   :  { %1467 = vrot.lane.b32.xlu1 %v3395_v54, %s3593_s1 }
 0xdaf   :  { %v1364_v55 = vpop.permute.xlu0 %1363 }
 0xdb0   :  { %v1366_v38 = vmul.f32 %v3389_v39, %v1364_v55 }
 0xdb2   :  { %1368 = vrot.lane.b32.xlu0 %v1366_v38, %s3594_s4  ;;  %v1468_v56 = vpop.permute.xlu1 %1467 }
 0xdb3   :  { %v1470_v58 = vmul.f32 %v3391_v42, %v1468_v56 }
 0xdb5   :  { %1544 = vrot.lane.b32.xlu1 %v1470_v58, %s3594_s4 }
 0xe24   :  { %v1369_v59 = vpop.permute.xlu0 %1368 }
 0xe25   :  { %1371 = vst.msk [vmem:[#allocation3 + $0x3] sm:$0x1] %vm82_vm0, %v1369_v59  ;;  %3026 = vmatmul.mubr.msk.f32.vlgmr.msra.gmra.mrb[14].mxu0 %vm176_vm2, %v1369_v59 }
 0xe26   :  { %1372 = vst.msk [vmem:[#allocation3 + $0xa] sm:$0x2] %vm531_vm3, %v1369_v59  ;;  %3249 = vmatpush3.bf16.msra.mxu0 %v3718_v8  ;;  %3047 = vmatprep.mubr.msk.f32.mxu0 %vm3591_vm1, %v3592_v13 }
 0xe27   :  { %v1545_v62 = vpop.permute.xlu1 %1544  ;;  %3250 = vmatprep.subr.bf16.mxu0 %v3590_v4 }
 0xe28   :  { %3037 = vmatmul.mubr.msk.f32.vlgmr.msra.gmra.mrb[14].mxu1 %vm176_vm2, %v1545_v62 }
 0xe29   :  { %3255 = vmatpush3.bf16.msra.mxu1 %v3860_v53  ;;  %3058 = vmatprep.mubr.msk.f32.mxu1 %vm3591_vm1, %v3592_v13 }
 0xe2a   :  { %3252 = vmatpush3.bf16.msra.mxu0 %v3739_v12  ;;  %3256 = vmatprep.subr.bf16.mxu1 %v3590_v4 }
 0xe2b   :  { %3259 = vmatprep.subr.bf16.mxu0 %v3590_v4 }
 0xe2d   :  { %3048 = vmatmul.mubr.msk.f32.vlgmr.msra.gmra.mrb[16].mxu0 %vm176_vm2, %v1545_v62  ;;  %3258 = vmatpush3.bf16.msra.mxu1 %v3880_v60 }
 0xe2e   :  { %3261 = vmatpush3.bf16.msra.mxu0 %v3871_v57  ;;  %3265 = vmatprep.subr.bf16.mxu1 %v3590_v4 }
 0xe2f   :  { %3262 = vmatprep.subr.bf16.mxu0 %v3590_v4  ;;  %3069 = vmatprep.mubr.msk.f32.mxu0 %vm3591_vm1, %v3592_v13 }
 0xe32   :  { %3264 = vmatpush3.bf16.msra.mxu0 %v3884_v61 }
 0xe33   :  { %3271 = vmatprep.subr.bf16.mxu0 %v3590_v4 }
 0xef8   :  { %v1539_v63 = vpop.f32.mrb[14].mxu0 }
 0xef9   :  { %v3027_v0 = vpop.f32.mrb[15].mxu0 }
 0xefb   :  { %v1614_v1 = vpop.f32.mrb[14].mxu1 }
 0xefc   :  { %v1615_v2 = vadd.f32 %v1614_v1, %v1539_v63  ;;  %v3038_v3 = vpop.f32.mrb[15].mxu1 }
 0xefe   :  { %v1618_v6 = vadd.f32 %v3917_v5, %v1615_v2 }
 0xf00   :  { %3396 = vtanh.f32 %v1618_v6  ;;  %v1715_v7 = vpop.f32.mrb[16].mxu0  ;;  %v2712_v16 = vmul.f32 -1.442695, %v1618_v6 }
 0xf01   :  { %v1720_v9 = vrot.slane %v1715_v7, 6  ;;  %v3049_v10 = vpop.f32.mrb[17].mxu0 }
 0xf03   :  { %v1722_v11 = vadd.f32 %v1720_v9, %v3841_v36 }
 0xf05   :  { %3398 = vtanh.f32 %v1722_v11  ;;  %v2714_v17 = vmul.f32 -1.442695, %v1722_v11 }
 0xf06   :  { %3400 = vpow2.f32 %v2712_v16 }
 0xf07   :  { %3402 = vpow2.f32 %v2714_v17 }
 0xf0a   :  { %v3397_v14 = vpop.eup %3396 }
 0xf0b   :  { %1628 = vrot.lane.b32.xlu0 %v3397_v14, %s3593_s1 }
 0xf0f   :  { %v3399_v15 = vpop.eup %3398 }
 0xf10   :  { %1735 = vrot.lane.b32.xlu1 %v3399_v15, %s3593_s1  ;;  %v3401_v18 = vpop.eup %3400 }
 0xf11   :  { %v1622_v19 = vadd.f32 1.0, %v3401_v18  ;;  %v3403_v20 = vpop.eup %3402 }
 0xf12   :  { %v1726_v21 = vadd.f32 1.0, %v3403_v20 }
 0xf13   :  { %3404 = vrcp.f32 %v1622_v19 }
 0xf14   :  { %3406 = vrcp.f32 %v1726_v21 }
 0xf1d   :  { %v3405_v22 = vpop.eup %3404 }
 0xf1e   :  { %v3407_v25 = vpop.eup %3406  ;;  %v1626_v28 = vmul.f32 %v3405_v22, %v4049_v48 }
 0xf1f   :  { %v1733_v32 = vmul.f32 %v3407_v25, %v1731_v31 }
 0xf7d   :  { %v1629_v23 = vpop.permute.xlu0 %1628 }
 0xf7e   :  { %v1631_v24 = vmul.f32 %v3405_v22, %v1629_v23 }
 0xf80   :  { %1633 = vrot.lane.b32.xlu0 %v1631_v24, %s3594_s4 }
 0xf82   :  { %v1736_v26 = vpop.permute.xlu1 %1735 }
 0xf83   :  { %v1738_v27 = vmul.f32 %v3407_v25, %v1736_v26 }
 0xf85   :  { %1740 = vrot.lane.b32.xlu1 %v1738_v27, %s3594_s4 }
 0xff2   :  { %v1634_v29 = vpop.permute.xlu0 %1633 }
 0xff3   :  { %v4089_v30 = vadd.f32 %v1634_v29, %v1626_v28 }
 0xff5   :  { %3408 = vtanh.f32 %v4089_v30 }
 0xff7   :  { %v1741_v33 = vpop.permute.xlu1 %1740 }
 0xff8   :  { %v4093_v34 = vadd.f32 %v1741_v33, %v1733_v32 }
 0xffa   :  { %3410 = vtanh.f32 %v4093_v34  ;;  %v2011_v14 = vrot.slane %v4093_v34, 6 }
 0xfff   :  { %v3409_v35 = vpop.eup %3408 }
0x1000   :  { %1639 = vrot.lane.b32.xlu0 %v3409_v35, %s3593_s1 }
0x1004   :  { %v3411_v37 = vpop.eup %3410 }
0x1005   :  { %1746 = vrot.lane.b32.xlu1 %v3411_v37, %s3593_s1 }
0x1072   :  { %v1640_v39 = vpop.permute.xlu0 %1639 }
0x1073   :  { %v1642_v40 = vmul.f32 %v3405_v22, %v1640_v39 }
0x1075   :  { %1644 = vrot.lane.b32.xlu0 %v1642_v40, %s3594_s4 }
0x1077   :  { %v1747_v41 = vpop.permute.xlu1 %1746 }
0x1078   :  { %v1749_v42 = vmul.f32 %v3407_v25, %v1747_v41 }
0x107a   :  { %v1823_v43 = vrot.slane %v1749_v42, 2 }
0x107c   :  { %1824 = vrot.lane.b32.xlu1 %v1823_v43, %s3594_s4 }
0x10e7   :  { %v1645_v44 = vpop.permute.xlu0 %1644 }
0x10e8   :  { %1647 = vst.msk [vmem:[#allocation3 + $0x4] sm:$0x1] %vm82_vm0, %v1645_v44  ;;  %3059 = vmatmul.mubr.msk.f32.vlgmr.msra.gmra.mrb[16].mxu1 %vm176_vm2, %v1645_v44 }
0x10e9   :  { %1648 = vst.msk [vmem:[#allocation3 + $0xb] sm:$0x2] %vm531_vm3, %v1645_v44  ;;  %3267 = vmatpush3.bf16.msra.mxu1 %v3718_v8  ;;  %3080 = vmatprep.mubr.msk.f32.mxu1 %vm3591_vm1, %v3592_v13 }
0x10ea   :  { %3268 = vmatprep.subr.bf16.mxu1 %v3590_v4 }
0x10ed   :  { %3270 = vmatpush3.bf16.msra.mxu1 %v3739_v12 }
0x10ee   :  { %v1825_v45 = vpop.permute.xlu1 %1824  ;;  %3277 = vmatprep.subr.bf16.mxu1 %v3590_v4 }
0x10ef   :  { %3070 = vmatmul.mubr.msk.f32.vlgmr.msra.gmra.mrb[18].mxu0 %vm176_vm2, %v1825_v45 }
0x10f0   :  { %3081 = vmatmul.mubr.msk.f32.vlgmr.msra.gmra.mrb[18].mxu1 %vm176_vm2, %v1825_v45  ;;  %3273 = vmatpush3.bf16.msra.mxu0 %v3860_v53 }
0x10f1   :  { %3274 = vmatprep.subr.bf16.mxu0 %v3590_v4  ;;  %3279 = vmatpush3.bf16.msra.mxu1 %v3871_v57 }
0x10f2   :  { %3091 = vmatprep.mubr.msk.f32.mxu0 %vm3591_vm1, %v3592_v13  ;;  %3280 = vmatprep.subr.bf16.mxu1 %v3590_v4 }
0x10f3   :  { %3102 = vmatprep.mubr.msk.f32.mxu1 %vm3591_vm1, %v3592_v13 }
0x10f4   :  { %3276 = vmatpush3.bf16.msra.mxu0 %v3880_v60 }
0x10f5   :  { %3283 = vmatprep.subr.bf16.mxu0 %v3590_v4  ;;  %3282 = vmatpush3.bf16.msra.mxu1 %v3884_v61 }
0x10f6   :  { %3289 = vmatprep.subr.bf16.mxu1 %v3590_v4 }
0x11bb   :  { %v1818_v46 = vpop.f32.mrb[16].mxu1 }
0x11bc   :  { %v3060_v47 = vpop.f32.mrb[17].mxu1 }
0x11c2   :  { %v1894_v48 = vpop.f32.mrb[18].mxu0 }
0x11c3   :  { %v1895_v49 = vadd.f32 %v1894_v48, %v1818_v46  ;;  %v3071_v50 = vpop.f32.mrb[19].mxu0  ;;  %v1995_v51 = vpop.f32.mrb[18].mxu1 }
0x11c4   :  { %v2000_v52 = vrot.slane %v1995_v51, 4  ;;  %v3082_v54 = vpop.f32.mrb[19].mxu1 }
0x11c5   :  { %v1898_v55 = vadd.f32 %v3917_v5, %v1895_v49 }
0x11c6   :  { %v2002_v38 = vadd.f32 %v2000_v52, %v3841_v36 }
0x11c7   :  { %3412 = vtanh.f32 %v1898_v55  ;;  %v2717_v59 = vmul.f32 -1.442695, %v1898_v55 }
0x11c8   :  { %3414 = vtanh.f32 %v2002_v38  ;;  %v2719_v62 = vmul.f32 -1.442695, %v2002_v38 }
0x11c9   :  { %3416 = vpow2.f32 %v2717_v59 }
0x11ca   :  { %3418 = vpow2.f32 %v2719_v62 }
0x11d1   :  { %v3413_v56 = vpop.eup %3412 }
0x11d2   :  { %v3415_v58 = vpop.eup %3414  ;;  %1908 = vrot.lane.b32.xlu0 %v3413_v56, %s3593_s1 }
0x11d3   :  { %2015 = vrot.lane.b32.xlu1 %v3415_v58, %s3593_s1  ;;  %v3417_v63 = vpop.eup %3416 }
0x11d4   :  { %v3419_v0 = vpop.eup %3418  ;;  %v1902_v1 = vadd.f32 1.0, %v3417_v63 }
0x11d5   :  { %v2006_v2 = vadd.f32 1.0, %v3419_v0 }
0x11d6   :  { %3420 = vrcp.f32 %v1902_v1 }
0x11d7   :  { %3422 = vrcp.f32 %v2006_v2 }
0x11e0   :  { %v3421_v3 = vpop.eup %3420 }
0x11e1   :  { %v3423_v7 = vpop.eup %3422  ;;  %v1906_v15 = vmul.f32 %v3421_v3, %v4089_v30 }
0x11e2   :  { %v2013_v17 = vmul.f32 %v3423_v7, %v2011_v14 }
0x1244   :  { %v1909_v6 = vpop.permute.xlu0 %1908 }
0x1245   :  { %v1911_v9 = vmul.f32 %v3421_v3, %v1909_v6  ;;  %v2016_v10 = vpop.permute.xlu1 %2015 }
0x1246   :  { %v2018_v11 = vmul.f32 %v3423_v7, %v2016_v10 }
0x1247   :  { %1913 = vrot.lane.b32.xlu0 %v1911_v9, %s3594_s4  ;;  %v3452_v9 = vld [vmem:[%s4244_s7] ss:$0 sm:$0xff]  ;;  %s3595_s7 = smov 96  }
0x1248   :  { %2020 = vrot.lane.b32.xlu1 %v2018_v11, %s3594_s4 }
0x12b9   :  { %v1914_v16 = vpop.permute.xlu0 %1913 }
0x12ba   :  { %v4131_v18 = vadd.f32 %v1914_v16, %v1906_v15  ;;  %v2021_v19 = vpop.permute.xlu1 %2020 }
0x12bb   :  { %v4133_v20 = vadd.f32 %v2021_v19, %v2013_v17 }
0x12bc   :  { %3424 = vtanh.f32 %v4131_v18 }
0x12bd   :  { %3426 = vtanh.f32 %v4133_v20  ;;  %v2291_v49 = vrot.slane %v4133_v20, 6 }
0x12c6   :  { %v3425_v21 = vpop.eup %3424 }
0x12c7   :  { %v3427_v22 = vpop.eup %3426  ;;  %1919 = vrot.lane.b32.xlu0 %v3425_v21, %s3593_s1 }
0x12c8   :  { %2026 = vrot.lane.b32.xlu1 %v3427_v22, %s3593_s1 }
0x1339   :  { %v1920_v23 = vpop.permute.xlu0 %1919 }
0x133a   :  { %v1922_v24 = vmul.f32 %v3421_v3, %v1920_v23  ;;  %v2027_v25 = vpop.permute.xlu1 %2026 }
0x133b   :  { %v2029_v26 = vmul.f32 %v3423_v7, %v2027_v25  ;;  %v2492_v25 = vld [vmem:[#allocation8 + $0x8] sm:$0xff] }
0x133c   :  { %1924 = vrot.lane.b32.xlu0 %v1922_v24, %s3594_s4  ;;  %v2491_v24 = vld [vmem:[#allocation8] sm:$0xff] }
0x133d   :  { %v2103_v27 = vrot.slane %v2029_v26, 4  ;;  %v3301_v26 = vpack.c.bf16 %v2492_v25, %v2491_v24 }
0x133f   :  { %2104 = vrot.lane.b32.xlu1 %v2103_v27, %s3594_s4  ;;  %v2493_v27 = vld [vmem:[#allocation8 + $0x10] sm:$0xff] }
0x13ae   :  { %v1925_v28 = vpop.permute.xlu0 %1924 }
0x13af   :  { %1927 = vst.msk [vmem:[#allocation3 + $0x5] sm:$0x1] %vm82_vm0, %v1925_v28  ;;  %3092 = vmatmul.mubr.msk.f32.vlgmr.msra.gmra.mrb[20].mxu0 %vm176_vm2, %v1925_v28 }
0x13b0   :  { %1928 = vst.msk [vmem:[#allocation3 + $0xc] sm:$0x2] %vm531_vm3, %v1925_v28  ;;  %3285 = vmatpush3.bf16.msra.mxu0 %v3718_v8  ;;  %3113 = vmatprep.mubr.msk.f32.mxu0 %vm3591_vm1, %v3592_v13  ;;  %v2494_v28 = vld [vmem:[#allocation8 + $0x18] sm:$0xff] }
0x13b1   :  { %v2105_v29 = vpop.permute.xlu1 %2104  ;;  %3286 = vmatprep.subr.bf16.mxu0 %v3590_v4 }
0x13b2   :  { %3103 = vmatmul.mubr.msk.f32.vlgmr.msra.gmra.mrb[20].mxu1 %vm176_vm2, %v2105_v29 }
0x13b3   :  { %3291 = vmatpush3.bf16.msra.mxu1 %v3860_v53  ;;  %3124 = vmatprep.mubr.msk.f32.mxu1 %vm3591_vm1, %v3592_v13 }
0x13b4   :  { %3288 = vmatpush3.bf16.msra.mxu0 %v3739_v12  ;;  %3292 = vmatprep.subr.bf16.mxu1 %v3590_v4 }
0x13b5   :  { %3295 = vmatprep.subr.bf16.mxu0 %v3590_v4 }
0x13b7   :  { %3114 = vmatmul.mubr.msk.f32.vlgmr.msra.gmra.mrb[22].mxu0 %vm176_vm2, %v2105_v29  ;;  %3294 = vmatpush3.bf16.msra.mxu1 %v3880_v60  ;;  %v3305_v29 = vpack.c.bf16 %v2494_v28, %v2493_v27 }
0x13b8   :  { %3297 = vmatpush3.bf16.msra.mxu0 %v3871_v57  ;;  %3135 = vmatprep.mubr.msk.f32.mxu0 %vm3591_vm1, %v3592_v13 }
0x13b9   :  { %3298 = vmatprep.subr.bf16.mxu0 %v3590_v4  ;;  %3302 = vmatprep.subr.bf16.mxu1 %v3301_v26 }
0x13bc   :  { %3300 = vmatpush3.bf16.msra.mxu0 %v3884_v61 }
0x1482   :  { %v2098_v8 = vpop.f32.mrb[20].mxu0 }
0x1483   :  { %v3093_v53 = vpop.f32.mrb[21].mxu0 }
0x1485   :  { %v2174_v12 = vpop.f32.mrb[20].mxu1 }
0x1486   :  { %v2175_v30 = vadd.f32 %v2174_v12, %v2098_v8  ;;  %v3104_v31 = vpop.f32.mrb[21].mxu1 }
0x1488   :  { %v2178_v32 = vadd.f32 %v3917_v5, %v2175_v30 }
0x148a   :  { %3428 = vtanh.f32 %v2178_v32  ;;  %v2275_v33 = vpop.f32.mrb[22].mxu0  ;;  %v2722_v13 = vmul.f32 -1.442695, %v2178_v32 }
0x148b   :  { %v2280_v34 = vrot.slane %v2275_v33, 2  ;;  %v3115_v60 = vpop.f32.mrb[23].mxu0 }
0x148d   :  { %v2282_v57 = vadd.f32 %v2280_v34, %v3841_v36 }
0x148f   :  { %3430 = vtanh.f32 %v2282_v57  ;;  %v2724_v61 = vmul.f32 -1.442695, %v2282_v57 }
0x1490   :  { %3432 = vpow2.f32 %v2722_v13 }
0x1491   :  { %3434 = vpow2.f32 %v2724_v61 }
0x1494   :  { %v3429_v35 = vpop.eup %3428 }
0x1495   :  { %2188 = vrot.lane.b32.xlu1 %v3429_v35, %s3593_s1 }
0x1499   :  { %v3431_v4 = vpop.eup %3430 }
0x149a   :  { %2295 = vrot.lane.b32.xlu0 %v3431_v4, %s3593_s1  ;;  %v3433_v37 = vpop.eup %3432 }
0x149b   :  { %v2182_v39 = vadd.f32 1.0, %v3433_v37  ;;  %v3435_v5 = vpop.eup %3434 }
0x149c   :  { %v2286_v40 = vadd.f32 1.0, %v3435_v5 }
0x149d   :  { %3436 = vrcp.f32 %v2182_v39 }
0x149e   :  { %3438 = vrcp.f32 %v2286_v40 }
0x14a7   :  { %v3437_v41 = vpop.eup %3436 }
0x14a8   :  { %v3439_v43 = vpop.eup %3438  ;;  %v2186_v46 = vmul.f32 %v3437_v41, %v4131_v18 }
0x14a9   :  { %v2293_v50 = vmul.f32 %v3439_v43, %v2291_v49 }
0x1507   :  { %v2189_v42 = vpop.permute.xlu1 %2188 }
0x1508   :  { %v2191_v36 = vmul.f32 %v3437_v41, %v2189_v42 }
0x150a   :  { %2193 = vrot.lane.b32.xlu1 %v2191_v36, %s3594_s4 }
0x150c   :  { %v2296_v44 = vpop.permute.xlu0 %2295 }
0x150d   :  { %v2298_v45 = vmul.f32 %v3439_v43, %v2296_v44 }
0x150f   :  { %2300 = vrot.lane.b32.xlu0 %v2298_v45, %s3594_s4 }
0x157c   :  { %v2194_v47 = vpop.permute.xlu1 %2193 }
0x157d   :  { %v2196_v48 = vadd.f32 %v2194_v47, %v2186_v46 }
0x157f   :  { %3440 = vtanh.f32 %v2196_v48 }
0x1581   :  { %v2301_v51 = vpop.permute.xlu0 %2300 }
0x1582   :  { %v4170_v52 = vadd.f32 %v2301_v51, %v2293_v50 }
0x1584   :  { %3442 = vtanh.f32 %v4170_v52 }
0x1589   :  { %v3441_v54 = vpop.eup %3440 }
0x158a   :  { %2199 = vrot.lane.b32.xlu1 %v3441_v54, %s3593_s1 }
0x158e   :  { %v3443_v55 = vpop.eup %3442 }
0x158f   :  { %2306 = vrot.lane.b32.xlu0 %v3443_v55, %s3593_s1 }
0x15fc   :  { %v2200_v38 = vpop.permute.xlu1 %2199 }
0x15fd   :  { %v2202_v56 = vmul.f32 %v3437_v41, %v2200_v38 }
0x15ff   :  { %2204 = vrot.lane.b32.xlu0 %v2202_v56, %s3594_s4 }
0x1601   :  { %v2307_v58 = vpop.permute.xlu0 %2306 }
0x1602   :  { %v2309_v59 = vmul.f32 %v3439_v43, %v2307_v58 }
0x1604   :  { %v2383_v62 = vrot.slane %v2309_v59, 6 }
0x1606   :  { %2384 = vrot.lane.b32.xlu1 %v2383_v62, %s3594_s4 }
0x1671   :  { %v2205_v63 = vpop.permute.xlu0 %2204 }
0x1672   :  { %2207 = vst.msk [vmem:[#allocation3 + $0x6] sm:$0x1] %vm82_vm0, %v2205_v63  ;;  %3125 = vmatmul.mubr.msk.f32.vlgmr.msra.gmra.mrb[22].mxu1 %vm176_vm2, %v2205_v63 }
0x1673   :  { %2208 = vst.msk [vmem:[#allocation3 + $0xd] sm:$0x2] %vm531_vm3, %v2205_v63  ;;  %3304 = vmatpush3.bf16.msra.mxu1 %v3301_v26 }
0x1674   :  { %3306 = vmatprep.subr.bf16.mxu1 %v3305_v29 }
0x1677   :  { %3308 = vmatpush3.bf16.msra.mxu1 %v3305_v29 }
0x1678   :  { %v2385_v0 = vpop.permute.xlu1 %2384 }
0x1679   :  { %3136 = vmatmul.mubr.msk.f32.vlgmr.msra.gmra.mrb[24].mxu0 %vm176_vm2, %v2385_v0 }
0x1745   :  { %v2378_v1 = vpop.f32.mrb[22].mxu1 }
0x1746   :  { %v3126_v2 = vpop.f32.mrb[23].mxu1 }
0x174c   :  { %v2454_v3 = vpop.f32.mrb[24].mxu0 }
0x174d   :  { %v2455_v6 = vadd.f32 %v2454_v3, %v2378_v1  ;;  %v3137_v7 = vpop.f32.mrb[25].mxu0 }
0x174f   :  { %v2458_v10 = vadd.f32 %v3452_v9, %v2455_v6 }
0x1751   :  { %3444 = vtanh.f32 %v2458_v10  ;;  %v2727_v14 = vmul.f32 -1.442695, %v2458_v10 }
0x1753   :  { %3446 = vpow2.f32 %v2727_v14 }
0x175b   :  { %v3445_v11 = vpop.eup %3444 }
0x175c   :  { %2468 = vrot.lane.b32.xlu0 %v3445_v11, %s3593_s1 }
0x175d   :  { %v3447_v15 = vpop.eup %3446 }
0x175e   :  { %v2462_v16 = vadd.f32 1.0, %v3447_v15 }
0x1760   :  { %3448 = vrcp.f32 %v2462_v16 }
0x176a   :  { %v3449_v17 = vpop.eup %3448 }
0x176b   :  { %v2466_v20 = vmul.f32 %v3449_v17, %v2196_v48 }
0x17ce   :  { %v2469_v18 = vpop.permute.xlu0 %2468 }
0x17cf   :  { %v2471_v19 = vmul.f32 %v3449_v17, %v2469_v18 }
0x17d1   :  { %2473 = vrot.lane.b32.xlu1 %v2471_v19, %s3594_s4 }
0x1843   :  { %v2474_v21 = vpop.permute.xlu1 %2473 }
0x1844   :  { %v2476_v22 = vadd.f32 %v2474_v21, %v2466_v20 }
0x1846   :  { %3450 = vtanh.f32 %v2476_v22 }
0x1850   :  { %v3451_v23 = vpop.eup %3450 }
0x1851   :  { %2479 = vrot.lane.b32.xlu0 %v3451_v23, %s3593_s1 }
0x1855   :  { %2586 = vrot.lane.b32.xlu0 %v2309_v59, %s3594_s4 }
0x1859   :  { %2600 = vrot.lane.b32.xlu0 %v2476_v22, %s3595_s7 }
0x18c3   :  { %v2480_v8 = vpop.permute.xlu0 %2479 }
0x18c4   :  { %v2482_v53 = vmul.f32 %v3449_v17, %v2480_v8 }
0x18c6   :  { %2484 = vrot.lane.b32.xlu1 %v2482_v53, %s3594_s4 }
0x18c7   :  { %v2587_v12 = vpop.permute.xlu0 %2586 }
0x18c8   :  { %2590 = vst.msk [vmem:[#allocation12 - $0x6] sm:$0xc0] %vm2589_vm4, %v2587_v12 }
0x18ca   :  { %2595 = vrot.lane.b32.xlu1 %v4170_v52, %s3595_s7 }
0x18cb   :  { %v2601_v30 = vpop.permute.xlu0 %2600 }
0x18cc   :  { %2604 = vst.msk [vmem:[#allocation14 + $0x2] sm:$0x3] %vm2592_vm5, %v2601_v30 }
0x1938   :  { %v2485_v31 = vpop.permute.xlu1 %2484 }
0x1939   :  { %2487 = vst.msk [vmem:[#allocation3 + $0x7] sm:$0x1] %vm82_vm0, %v2485_v31 }
0x193a   :  { %2488 = vst.msk [vmem:[#allocation3 + $0xe] sm:$0x2] %vm531_vm3, %v2485_v31 }
0x193b   :  { %2593 = vst.msk [vmem:[#allocation12 + $0x2] sm:$0x3] %vm2592_vm5, %v2485_v31 }
0x193c   :  { %v2596_v32 = vpop.permute.xlu1 %2595 }
0x193d   :  { %2598 = vst.msk [vmem:[#allocation14 - $0x6] sm:$0xc0] %vm2589_vm4, %v2596_v32 }
0x1940   :  { %v2489_v33 = vld [vmem:[#allocation3] sm:$0xff] }
0x1941   :  { %v2490_v34 = vld [vmem:[#allocation3 + $0x8] sm:$0xff]  ;;  %3146 = vmatprep.mubr.msk.f32.mxu1 %vm176_vm2, %v2489_v33 }
0x1942   :  { %3147 = vmatmul.mubr.msk.f32.vlgmr.msra.gmra.mrb[24].mxu1 %vm176_vm2, %v2490_v34 }
0x1943   :  { %3520 = shalt.err (!%p3517_p11)
}
0x1944   :  { %s3521_s20 = scalar_lea.hbm %s4248_s11, 64 }
0x1945   :  { %p3522_p12 = scmp.ne.s32.totalorder %s4248_s11, %s3521_s20  ;;  %p3525_p13 = scmp.lt.u32.totalorder %s3521_s20, %s4248_s11 }
0x1947   :  { %p3527_p0 = pnand %p3525_p13, %p3522_p12 }
0x1949   :  { %3530 = shalt.err (!%p3527_p0)
}
0x194a   :  { %s3597_s27 = smov 2   ;;  %s3598_s2 = smov [#allocation14]  }
0x194b   :  { %2628 = dma.vmem_to_hbm [thread:$0]  %s2623_s19, 64, %s4248_s11, [#allocation13], %s3594_s4, %s3594_s4, %s3597_s27  }
0x194c   :  { %s2634_s15 = sshll.u32 %s3598_s2, 4  ;;  %s2635_s15 = int_to_ptr.vmem [resolvable:$true] %s2634_s15 }
0x194d   :  { %s3531_s0 = scalar_lea.vmem %s2635_s15, 64  ;;  %p3536_p2 = scmp.lt.s32.totalorder %s2635_s15, %s2635_s15 }
0x194e   :  { %p3532_p1 = scmp.ne.s32.totalorder %s2635_s15, %s3531_s0  ;;  %p3537_p3 = scmp.lt.s32.totalorder %s3531_s0, %s3531_s0 }
0x1950   :  { %p3538_p4 = por %p3537_p3, %p3536_p2 }
0x1952   :  { %p3539_p5 = pnand %p3538_p4, %p3532_p1 }
0x1954   :  { %3542 = shalt.err (!%p3539_p5)
}
0x1955   :  { %s3543_s22 = scalar_lea.hbm %s4249_s12, 64 }
0x1956   :  { %p3544_p6 = scmp.ne.s32.totalorder %s4249_s12, %s3543_s22  ;;  %p3547_p7 = scmp.lt.u32.totalorder %s3543_s22, %s4249_s12 }
0x1958   :  { %p3549_p8 = pnand %p3547_p7, %p3544_p6 }
0x195a   :  { %3552 = shalt.err (!%p3549_p8)
}
0x195b   :  { %2640 = dma.vmem_to_hbm [thread:$0]  %s2635_s15, 64, %s4249_s12, [#allocation13], %s3594_s4, %s3594_s4, %s3597_s27   ;;  %v2728_v60 = vld [vmem:[#allocation9] ss:$0 sm:$0xff]  ;;  %vm2583_vm6 = vcmask 523264  }
0x195c   :  { %s3599_s7 = smov [#allocation11]  }
0x195d   :  { %s2610_s16 = sshll.u32 %s3599_s7, 4  ;;  %s2611_s16 = int_to_ptr.vmem [resolvable:$true] %s2610_s16 }
0x195e   :  { %s3553_s19 = scalar_lea.vmem %s2611_s16, 256  ;;  %p3558_p10 = scmp.lt.s32.totalorder %s2611_s16, %s2611_s16 }
0x195f   :  { %p3554_p9 = scmp.ne.s32.totalorder %s2611_s16, %s3553_s19  ;;  %p3559_p11 = scmp.lt.s32.totalorder %s3553_s19, %s3553_s19 }
0x1961   :  { %p3560_p12 = por %p3559_p11, %p3558_p10 }
0x1963   :  { %p3561_p13 = pnand %p3560_p12, %p3554_p9 }
0x1a15   :  { %v3148_v57 = vpop.f32.mrb[24].mxu1 }
0x1a16   :  { %v2580_v35 = vadd.f32 %v3148_v57, %v2728_v60  ;;  %v2574_v4 = vpop.f32.mrb[25].mxu1 }
0x1a17   :  { %v2575_v13 = vadd.f32 %v2728_v60, %v2574_v4 }
0x1a18   :  { %2585 = vst.msk [vmem:[#allocation11 + $0x8] sm:$0xff] %vm2583_vm6, %v2580_v35 }
0x1a19   :  { %2584 = vst.msk [vmem:[#allocation11] sm:$0xff] %vm2583_vm6, %v2575_v13 }
0x1a1a   :  { %3564 = shalt.err (!%p3561_p13)
}
0x1a1b   :  { %s3565_s4 = scalar_lea.hbm %s4247_s10, 256 }
0x1a1c   :  { %p3566_p0 = scmp.ne.s32.totalorder %s4247_s10, %s3565_s4  ;;  %p3569_p1 = scmp.lt.u32.totalorder %s3565_s4, %s4247_s10 }
0x1a1e   :  { %p3571_p2 = pnand %p3569_p1, %p3566_p0 }
0x1a20   :  { %3574 = shalt.err (!%p3571_p2)
}
0x1a21   :  { %2616 = dma.vmem_to_hbm [thread:$0]  %s2611_s16, 256, %s4247_s10, [#allocation6], %s3587_s17, %s3587_s17, %s3588_s18  }
0x1a22   :  { %3581 = dma.done.wait [#allocation6], 256  }
0x1a23   :  { %3582 = vsyncadd [#allocation6], 4294967040 }
0x1a24   :  { %3583 = dma.done.wait [#allocation13], 128  }
0x1a25   :  { %3584 = vsyncadd [#allocation13], 4294967168 }
0x1a26   :  { %2650 = vsyncpa [#allocation5], 1 }
0x1a27   :  { %2651 = vsyncpa [#allocation10], 1 }
0x1a28   :  { %2652 = vsyncpa [#allocation6], 1 }
0x1a29   :  { %2653 = vsyncpa [#allocation13], 1 }
0x1a2a   :  { %2654 = vsyncpa [#allocation7], 1 }

</bundles_post_ra>
